<compile_context>
chip_gen: v5e
topology: v5e:2x2
jax: 0.10.0
libtpu: 0.0.40
codegen_flags: <defaults>
</compile_context>

<pallas_src>
import functools

import jax
import jax.numpy as jnp
from jax import lax
from jax.experimental import pallas as pl
from jax.experimental.pallas import tpu as pltpu


def _cube_taps(x, y, z, res):
    """OpenGL cube-map face selection + per-face bilinear tap indices/weights.

    x, y, z: equal-shaped float32 arrays (world-space ray direction components).
    Returns (face, x0, x1, y0, y1, wx, wy), all with the same shape as x.
    Shared by the Pallas kernel and the pure-JAX reference.
    """
    ax, ay, az = jnp.abs(x), jnp.abs(y), jnp.abs(z)
    is_x = (ax >= ay) & (ax >= az)
    y_dom = ay >= az
    ma = jnp.maximum(jnp.where(is_x, ax, jnp.where(y_dom, ay, az)), 1e-12)
    px, py, pz = x >= 0.0, y >= 0.0, z >= 0.0

    face = jnp.where(is_x, jnp.where(px, 0, 1),
                     jnp.where(y_dom, jnp.where(py, 2, 3),
                               jnp.where(pz, 4, 5))).astype(jnp.int32)
    sc = jnp.where(is_x, jnp.where(px, -z, z),
                   jnp.where(y_dom, x, jnp.where(pz, x, -x)))
    tc = jnp.where(is_x, -y,
                   jnp.where(y_dom, jnp.where(py, z, -z), -y))

    inv_ma = 1.0 / ma               # one divide instead of two
    u = 0.5 * (sc * inv_ma + 1.0)   # [0, 1]
    v = 0.5 * (tc * inv_ma + 1.0)

    fx = u * res - 0.5
    fy = v * res - 0.5
    x0f = jnp.floor(fx)
    y0f = jnp.floor(fy)
    wx = fx - x0f
    wy = fy - y0f
    x0 = jnp.clip(x0f.astype(jnp.int32), 0, res - 1)
    x1 = jnp.clip(x0f.astype(jnp.int32) + 1, 0, res - 1)
    y0 = jnp.clip(y0f.astype(jnp.int32), 0, res - 1)
    y1 = jnp.clip(y0f.astype(jnp.int32) + 1, 0, res - 1)
    # TODO(synk): nvdiffrast boundary_mode='cube' blends across adjacent faces
    # at cube edges (seamless filtering); here taps clamp to the selected face.
    return face, x0, x1, y0, y1, wx, wy


def _sky_kernel(cube_ref, dirs_ref, out_ref, *, res):
    """cube_ref: (3R, 6R) fused channel-major cubemap, cube[c*R + x, face*R + y].
    dirs_ref: (3, T) world-space ray directions (f32).  out_ref: (3, T) f32 RGB."""
    nrows = 6 * res
    cdt = cube_ref.dtype

    xw = dirs_ref[0:1, :]                      # (1, T)
    yw = dirs_ref[1:2, :]
    zw = dirs_ref[2:3, :]

    # TODO(synk): the tap math runs on (1, T) arrays (1/8 sublane occupancy);
    # packing it into an (8, T/8) layout + XLU relayout of the six results
    # would recover ~8x of this VALU work for small R.
    face, x0, x1, y0, y1, wx, wy = _cube_taps(xw, yw, zw, res)
    r0 = face * res + y0                       # (1, T) row ids: face*R + y
    r1 = face * res + y1

    # Column iotas; the == compare broadcasts them against the (1, T) ids, so
    # no (6R, T)/(R, T) int32 iota is materialized each grid step.
    ri = lax.broadcasted_iota(jnp.int32, (nrows, 1), 0)
    ci = lax.broadcasted_iota(jnp.int32, (res, 1), 0)

    # Separable one-hot gather weights in the compute dtype (duplicate clamped
    # taps simply sum their weights, matching the reference).
    wyc = wy.astype(cdt)
    wxc = wx.astype(cdt)
    w_row = (jnp.where(ri == r0, 1.0 - wyc, 0.0)
             + jnp.where(ri == r1, wyc, 0.0))          # (6R, T)
    w_col = (jnp.where(ci == x0, 1.0 - wxc, 0.0)
             + jnp.where(ci == x1, wxc, 0.0))          # (R, T)

    # Row (wy) gather for ALL THREE channels in one MXU call:
    # (3R, 6R) @ (6R, T) -> (3R, T), f32 accumulation.
    rows_all = jnp.dot(cube_ref[...], w_row, preferred_element_type=jnp.float32)

    # Column (wx) gather: per-pixel mix + sublane reduce on static channel
    # slices; each channel row is stored directly (lane-dense, no concat).
    for c in range(3):
        seg = rows_all[c * res:(c + 1) * res, :]               # (R, T)
        chan = jnp.sum(w_col * seg, axis=0, keepdims=True)     # (1, T) f32
        out_ref[c:c + 1, :] = jnp.clip(chan, 0.0, 1.0)


def _camera_dirs_cm(K, H, W):
    """get_rays_torch(perturb=False): pixel-center camera-space ray directions,
    built directly channel-major as (3, H*W) (no host-side (P,3)->(3,P) pass)."""
    xs = jnp.arange(W, dtype=jnp.float32) + 0.5
    ys = jnp.arange(H, dtype=jnp.float32) + 0.5
    ii, jj = jnp.meshgrid(xs, ys, indexing="xy")       # (H, W)
    dx = ((ii - K[0, 2]) / K[0, 0]).reshape(1, -1)
    dy = ((jj - K[1, 2]) / K[1, 1]).reshape(1, -1)
    dz = jnp.ones_like(dx)
    return jnp.concatenate([dx, dy, dz], axis=0)       # (3, H*W)


def _pick_tile(npix, max_tile):
    """Largest lane-aligned (multiple of 128) divisor of npix that is <= max_tile
    and still leaves >= 4 grid steps when possible."""
    best = None
    t = 128
    while t <= min(max_tile, npix):
        if npix % t == 0 and (best is None or npix // t >= 4):
            best = t
        t += 128
    return best


def sky_cubemap_forward(sky_cube_map, K, w2c, H, W, *, max_tile=2048,
                        compute_dtype=jnp.bfloat16):
    """Pallas implementation of SkyCubeMap.forward (mask is None path)."""
    res = sky_cube_map.shape[1]
    npix = H * W
    tile = _pick_tile(npix, max_tile)
    # TODO(synk): arbitrary resolutions need a pl.cdiv grid + masked tail store.
    assert tile is not None, "H*W must be a multiple of 128"

    # World-space ray dirs, channel-major, with the w2c rotation folded in on
    # the host (rot.T @ dirs == transpose(dirs^T @ rot); cube sampling is
    # scale-invariant, so no normalization is needed).
    rot = w2c[:3, :3].astype(jnp.float32)
    dirs_w = rot.T @ _camera_dirs_cm(K, H, W)                          # (3, P)

    # Fused channel-major cubemap: cube_cm[c*R + x, face*R + y] = sky[face, y, x, c].
    # NOTE: pure re-layout of a learned parameter; cache it across frames in a
    # real pipeline instead of recomputing per call.
    cube_cm = jnp.transpose(sky_cube_map, (3, 2, 0, 1)) \
                 .reshape(3 * res, 6 * res).astype(compute_dtype)

    # VMEM budget: resident cube (single-buffered) + double-buffered dirs/out
    # tiles + one-hot / matmul intermediates, 2x headroom, capped at 48 MiB so
    # Mosaic keeps scratch headroom on v7x (64 MiB physical VMEM per TC).
    itemsize = jnp.finfo(compute_dtype).bits // 8
    cube_bytes = (3 * res) * (6 * res) * itemsize
    io_bytes = 2 * 2 * (3 * tile * 4)                     # dirs + out, double-buffered
    interm_bytes = 7 * res * tile * itemsize + 3 * res * tile * 4
    vmem_limit = int(min(48 * 1024 * 1024,
                         max(32 * 1024 * 1024,
                             2 * (cube_bytes + io_bytes + interm_bytes))))

    out = pl.pallas_call(
        functools.partial(_sky_kernel, res=res),
        out_shape=jax.ShapeDtypeStruct((3, npix), jnp.float32),
        grid_spec=pltpu.PrefetchScalarGridSpec(
            num_scalar_prefetch=0,
            grid=(npix // tile,),
            in_specs=[
                # Grid-invariant cubemap: whole-array VMEM residency, copied in
                # once (single-buffered — no per-step DMA of a constant block).
                pl.BlockSpec(memory_space=pltpu.MemorySpace.VMEM),
                pl.BlockSpec((3, tile), lambda i: (0, i)),             # ray dirs
            ],
            out_specs=pl.BlockSpec((3, tile), lambda i: (0, i)),
        ),
        compiler_params=pltpu.CompilerParams(
            dimension_semantics=("parallel",),
            vmem_limit_bytes=vmem_limit),
    )(cube_cm, dirs_w)

    # Already channel-major: (3, H*W) -> (3, H, W) == permute(2, 0, 1).clamp.
    return out.reshape(3, H, W)


def sky_cubemap_forward_ref(sky_cube_map, K, w2c, H, W):
    """Pure-JAX reference (same cube-sampling math, fancy-index gather)."""
    res = sky_cube_map.shape[1]
    rot = w2c[:3, :3].astype(jnp.float32)
    d = jnp.transpose(rot.T @ _camera_dirs_cm(K, H, W))                # (P, 3)
    x, y, z = d[:, 0], d[:, 1], d[:, 2]
    face, x0, x1, y0, y1, wx, wy = _cube_taps(x, y, z, res)
    base = face * (res * res)
    cube_flat = sky_cube_map.reshape(6 * res * res, 3)

    def tap(yy, xx):
        return cube_flat[base + yy * res + xx]

    c = (((1.0 - wx) * (1.0 - wy))[:, None] * tap(y0, x0)
         + (wx * (1.0 - wy))[:, None] * tap(y0, x1)
         + ((1.0 - wx) * wy)[:, None] * tap(y1, x0)
         + (wx * wy)[:, None] * tap(y1, x1))
    c = jnp.clip(c, 0.0, 1.0).reshape(H, W, 3)
    return jnp.transpose(c, (2, 0, 1))


if __name__ == "__main__":
    key = jax.random.PRNGKey(0)
    k_cube, k_rot = jax.random.split(key)

    # Parameter from __init__: sky_cube_map of shape (6, resolution, resolution, 3).
    # The module initializes it to a constant (eps or 1-eps); we fill it with
    # deterministic uniform values so the bilinear sampler is actually exercised.
    res = 16
    sky_cube_map = jax.random.uniform(k_cube, (6, res, res, 3), dtype=jnp.float32)

    # Small camera: simple pinhole intrinsics, deterministic w2c (rotation via
    # QR of a PRNGKey(0) normal matrix; translation does not affect ray dirs).
    H, W = 32, 64
    fx = fy = float(H)
    K = jnp.array([[fx, 0.0, W / 2.0],
                   [0.0, fy, H / 2.0],
                   [0.0, 0.0, 1.0]], dtype=jnp.float32)
    A = jax.random.normal(k_rot, (3, 3), dtype=jnp.float32)
    Q, _ = jnp.linalg.qr(A)
    w2c = jnp.eye(4, dtype=jnp.float32).at[:3, :3].set(Q)

    # TODO(synk): training-time sky_mask path (boolean gather/scatter of masked
    # pixels) and optimizer/state-dict/latlong-export plumbing are host-side
    # control flow and are not part of this kernel.
    ref = sky_cubemap_forward_ref(sky_cube_map, K, w2c, H, W)

    # Exact path: f32 cube / one-hots, checked tightly against the reference.
    out_f32 = jax.block_until_ready(
        sky_cubemap_forward(sky_cube_map, K, w2c, H, W, compute_dtype=jnp.float32))
    assert out_f32.shape == (3, H, W), out_f32.shape
    assert out_f32.dtype == jnp.float32
    assert jnp.allclose(out_f32, ref, atol=1e-5, rtol=1e-5), (
        "f32 mismatch vs JAX reference; max abs diff = "
        f"{float(jnp.max(jnp.abs(out_f32 - ref)))}")

    # Default fast path: bf16 cube / one-hots, f32 MXU accumulation.
    out_bf16 = jax.block_until_ready(sky_cubemap_forward(sky_cube_map, K, w2c, H, W))
    assert out_bf16.shape == (3, H, W), out_bf16.shape
    assert out_bf16.dtype == jnp.float32
    assert jnp.allclose(out_bf16, ref, atol=3e-2, rtol=0.0), (
        "bf16 mismatch vs JAX reference; max abs diff = "
        f"{float(jnp.max(jnp.abs(out_bf16 - ref)))}")

    print("KERNEL_OK")
</pallas_src>

<mosaic_0001>
module attributes {stable_mosaic.version = 11 : i64} {
  func.func @_sky_kernel(%arg0: i32, %arg1: memref<48x96xf32, #tpu.memory_space<vmem>>, %arg2: memref<3x512xf32, #tpu.memory_space<vmem>>, %arg3: memref<3x512xf32, #tpu.memory_space<vmem>>) attributes {dimension_semantics = [#tpu.dimension_semantics<parallel>], iteration_bounds = array<i64: 4>, scalar_prefetch = 0 : i64, scratch_operands = 0 : i64, tpu.core_type = #tpu.core_type<tc>, window_params = [{pipeline_mode = #tpu.pipeline_mode<synchronous>, transform_indices = @transform_0, window_bounds = array<i64: 48, 96>}, {transform_indices = @transform_1, window_bounds = array<i64: 3, 512>}, {transform_indices = @transform_2, window_bounds = array<i64: 3, 512>}]} {
    %c0 = arith.constant 0 : index
    %c0_0 = arith.constant 0 : index
    %0 = vector.load %arg2[%c0, %c0_0] : memref<3x512xf32, #tpu.memory_space<vmem>>, vector<1x512xf32>
    %c1 = arith.constant 1 : index
    %c0_1 = arith.constant 0 : index
    %1 = vector.load %arg2[%c1, %c0_1] : memref<3x512xf32, #tpu.memory_space<vmem>>, vector<1x512xf32>
    %c2 = arith.constant 2 : index
    %c0_2 = arith.constant 0 : index
    %2 = vector.load %arg2[%c2, %c0_2] : memref<3x512xf32, #tpu.memory_space<vmem>>, vector<1x512xf32>
    %3 = math.absf %0 : vector<1x512xf32>
    %4 = math.absf %1 : vector<1x512xf32>
    %5 = math.absf %2 : vector<1x512xf32>
    %6 = arith.cmpf oge, %3, %4 : vector<1x512xf32>
    %7 = arith.cmpf oge, %3, %5 : vector<1x512xf32>
    %8 = arith.andi %6, %7 : vector<1x512xi1>
    %9 = arith.cmpf oge, %4, %5 : vector<1x512xf32>
    %10 = arith.select %9, %4, %5 : vector<1x512xi1>, vector<1x512xf32>
    %11 = arith.select %8, %3, %10 : vector<1x512xi1>, vector<1x512xf32>
    %cst = arith.constant 9.99999996E-13 : f32
    %12 = vector.broadcast %cst : f32 to vector<1x512xf32>
    %13 = arith.maximumf %11, %12 : vector<1x512xf32>
    %cst_3 = arith.constant 0.000000e+00 : f32
    %14 = vector.broadcast %cst_3 : f32 to vector<1x512xf32>
    %15 = arith.cmpf oge, %0, %14 : vector<1x512xf32>
    %cst_4 = arith.constant 0.000000e+00 : f32
    %16 = vector.broadcast %cst_4 : f32 to vector<1x512xf32>
    %17 = arith.cmpf oge, %1, %16 : vector<1x512xf32>
    %cst_5 = arith.constant 0.000000e+00 : f32
    %18 = vector.broadcast %cst_5 : f32 to vector<1x512xf32>
    %19 = arith.cmpf oge, %2, %18 : vector<1x512xf32>
    %c0_i32 = arith.constant 0 : i32
    %c1_i32 = arith.constant 1 : i32
    %20 = vector.broadcast %c0_i32 : i32 to vector<1x512xi32>
    %21 = vector.broadcast %c1_i32 : i32 to vector<1x512xi32>
    %22 = arith.select %15, %20, %21 : vector<1x512xi1>, vector<1x512xi32>
    %c2_i32 = arith.constant 2 : i32
    %c3_i32 = arith.constant 3 : i32
    %23 = vector.broadcast %c2_i32 : i32 to vector<1x512xi32>
    %24 = vector.broadcast %c3_i32 : i32 to vector<1x512xi32>
    %25 = arith.select %17, %23, %24 : vector<1x512xi1>, vector<1x512xi32>
    %c4_i32 = arith.constant 4 : i32
    %c5_i32 = arith.constant 5 : i32
    %26 = vector.broadcast %c4_i32 : i32 to vector<1x512xi32>
    %27 = vector.broadcast %c5_i32 : i32 to vector<1x512xi32>
    %28 = arith.select %19, %26, %27 : vector<1x512xi1>, vector<1x512xi32>
    %29 = arith.select %9, %25, %28 : vector<1x512xi1>, vector<1x512xi32>
    %30 = arith.select %8, %22, %29 : vector<1x512xi1>, vector<1x512xi32>
    %cst_6 = arith.constant 0.000000e+00 : f32
    %31 = vector.broadcast %cst_6 : f32 to vector<1x512xf32>
    %32 = arith.subf %31, %2 : vector<1x512xf32>
    %33 = arith.select %15, %32, %2 : vector<1x512xi1>, vector<1x512xf32>
    %cst_7 = arith.constant 0.000000e+00 : f32
    %34 = vector.broadcast %cst_7 : f32 to vector<1x512xf32>
    %35 = arith.subf %34, %0 : vector<1x512xf32>
    %36 = arith.select %19, %0, %35 : vector<1x512xi1>, vector<1x512xf32>
    %37 = arith.select %9, %0, %36 : vector<1x512xi1>, vector<1x512xf32>
    %38 = arith.select %8, %33, %37 : vector<1x512xi1>, vector<1x512xf32>
    %cst_8 = arith.constant 0.000000e+00 : f32
    %39 = vector.broadcast %cst_8 : f32 to vector<1x512xf32>
    %40 = arith.subf %39, %1 : vector<1x512xf32>
    %cst_9 = arith.constant 0.000000e+00 : f32
    %41 = vector.broadcast %cst_9 : f32 to vector<1x512xf32>
    %42 = arith.subf %41, %2 : vector<1x512xf32>
    %43 = arith.select %17, %2, %42 : vector<1x512xi1>, vector<1x512xf32>
    %cst_10 = arith.constant 0.000000e+00 : f32
    %44 = vector.broadcast %cst_10 : f32 to vector<1x512xf32>
    %45 = arith.subf %44, %1 : vector<1x512xf32>
    %46 = arith.select %9, %43, %45 : vector<1x512xi1>, vector<1x512xf32>
    %47 = arith.select %8, %40, %46 : vector<1x512xi1>, vector<1x512xf32>
    %cst_11 = arith.constant 1.000000e+00 : f32
    %48 = vector.broadcast %cst_11 : f32 to vector<1x512xf32>
    %49 = arith.divf %48, %13 : vector<1x512xf32>
    %50 = arith.mulf %38, %49 : vector<1x512xf32>
    %cst_12 = arith.constant 1.000000e+00 : f32
    %51 = vector.broadcast %cst_12 : f32 to vector<1x512xf32>
    %52 = arith.addf %50, %51 : vector<1x512xf32>
    %cst_13 = arith.constant 5.000000e-01 : f32
    %53 = vector.broadcast %cst_13 : f32 to vector<1x512xf32>
    %54 = arith.mulf %53, %52 : vector<1x512xf32>
    %55 = arith.mulf %47, %49 : vector<1x512xf32>
    %cst_14 = arith.constant 1.000000e+00 : f32
    %56 = vector.broadcast %cst_14 : f32 to vector<1x512xf32>
    %57 = arith.addf %55, %56 : vector<1x512xf32>
    %cst_15 = arith.constant 5.000000e-01 : f32
    %58 = vector.broadcast %cst_15 : f32 to vector<1x512xf32>
    %59 = arith.mulf %58, %57 : vector<1x512xf32>
    %cst_16 = arith.constant 1.600000e+01 : f32
    %60 = vector.broadcast %cst_16 : f32 to vector<1x512xf32>
    %61 = arith.mulf %54, %60 : vector<1x512xf32>
    %cst_17 = arith.constant 5.000000e-01 : f32
    %62 = vector.broadcast %cst_17 : f32 to vector<1x512xf32>
    %63 = arith.subf %61, %62 : vector<1x512xf32>
    %cst_18 = arith.constant 1.600000e+01 : f32
    %64 = vector.broadcast %cst_18 : f32 to vector<1x512xf32>
    %65 = arith.mulf %59, %64 : vector<1x512xf32>
    %cst_19 = arith.constant 5.000000e-01 : f32
    %66 = vector.broadcast %cst_19 : f32 to vector<1x512xf32>
    %67 = arith.subf %65, %66 : vector<1x512xf32>
    %68 = math.floor %63 : vector<1x512xf32>
    %69 = math.floor %67 : vector<1x512xf32>
    %70 = arith.subf %63, %68 : vector<1x512xf32>
    %71 = arith.subf %67, %69 : vector<1x512xf32>
    %72 = arith.fptosi %68 : vector<1x512xf32> to vector<1x512xi32>
    %c0_i32_20 = arith.constant 0 : i32
    %c15_i32 = arith.constant 15 : i32
    %73 = vector.broadcast %c0_i32_20 : i32 to vector<1x512xi32>
    %74 = arith.maxsi %73, %72 : vector<1x512xi32>
    %75 = vector.broadcast %c15_i32 : i32 to vector<1x512xi32>
    %76 = arith.minsi %75, %74 : vector<1x512xi32>
    %77 = arith.fptosi %68 : vector<1x512xf32> to vector<1x512xi32>
    %c1_i32_21 = arith.constant 1 : i32
    %78 = vector.broadcast %c1_i32_21 : i32 to vector<1x512xi32>
    %79 = arith.addi %77, %78 : vector<1x512xi32>
    %c0_i32_22 = arith.constant 0 : i32
    %c15_i32_23 = arith.constant 15 : i32
    %80 = vector.broadcast %c0_i32_22 : i32 to vector<1x512xi32>
    %81 = arith.maxsi %80, %79 : vector<1x512xi32>
    %82 = vector.broadcast %c15_i32_23 : i32 to vector<1x512xi32>
    %83 = arith.minsi %82, %81 : vector<1x512xi32>
    %84 = arith.fptosi %69 : vector<1x512xf32> to vector<1x512xi32>
    %c0_i32_24 = arith.constant 0 : i32
    %c15_i32_25 = arith.constant 15 : i32
    %85 = vector.broadcast %c0_i32_24 : i32 to vector<1x512xi32>
    %86 = arith.maxsi %85, %84 : vector<1x512xi32>
    %87 = vector.broadcast %c15_i32_25 : i32 to vector<1x512xi32>
    %88 = arith.minsi %87, %86 : vector<1x512xi32>
    %89 = arith.fptosi %69 : vector<1x512xf32> to vector<1x512xi32>
    %c1_i32_26 = arith.constant 1 : i32
    %90 = vector.broadcast %c1_i32_26 : i32 to vector<1x512xi32>
    %91 = arith.addi %89, %90 : vector<1x512xi32>
    %c0_i32_27 = arith.constant 0 : i32
    %c15_i32_28 = arith.constant 15 : i32
    %92 = vector.broadcast %c0_i32_27 : i32 to vector<1x512xi32>
    %93 = arith.maxsi %92, %91 : vector<1x512xi32>
    %94 = vector.broadcast %c15_i32_28 : i32 to vector<1x512xi32>
    %95 = arith.minsi %94, %93 : vector<1x512xi32>
    %c16_i32 = arith.constant 16 : i32
    %96 = vector.broadcast %c16_i32 : i32 to vector<1x512xi32>
    %97 = arith.muli %30, %96 : vector<1x512xi32>
    %98 = arith.addi %97, %88 : vector<1x512xi32>
    %c16_i32_29 = arith.constant 16 : i32
    %99 = vector.broadcast %c16_i32_29 : i32 to vector<1x512xi32>
    %100 = arith.muli %30, %99 : vector<1x512xi32>
    %101 = arith.addi %100, %95 : vector<1x512xi32>
    %102 = tpu.iota {dimensions = array<i32: 0>} : vector<96x1xi32>
    %103 = tpu.iota {dimensions = array<i32: 0>} : vector<16x1xi32>
    %104 = vector.broadcast %102 : vector<96x1xi32> to vector<96x512xi32>
    %105 = vector.broadcast %98 : vector<1x512xi32> to vector<96x512xi32>
    %106 = arith.cmpi eq, %104, %105 : vector<96x512xi32>
    %cst_30 = arith.constant 1.000000e+00 : f32
    %107 = vector.broadcast %cst_30 : f32 to vector<1x512xf32>
    %108 = arith.subf %107, %71 : vector<1x512xf32>
    %cst_31 = arith.constant 0.000000e+00 : f32
    %109 = vector.shape_cast %108 : vector<1x512xf32> to vector<1x512xf32>
    %110 = vector.broadcast %109 : vector<1x512xf32> to vector<96x512xf32>
    %111 = vector.broadcast %cst_31 : f32 to vector<96x512xf32>
    %112 = arith.select %106, %110, %111 : vector<96x512xi1>, vector<96x512xf32>
    %113 = vector.broadcast %102 : vector<96x1xi32> to vector<96x512xi32>
    %114 = vector.broadcast %101 : vector<1x512xi32> to vector<96x512xi32>
    %115 = arith.cmpi eq, %113, %114 : vector<96x512xi32>
    %cst_32 = arith.constant 0.000000e+00 : f32
    %116 = vector.shape_cast %71 : vector<1x512xf32> to vector<1x512xf32>
    %117 = vector.broadcast %116 : vector<1x512xf32> to vector<96x512xf32>
    %118 = vector.broadcast %cst_32 : f32 to vector<96x512xf32>
    %119 = arith.select %115, %117, %118 : vector<96x512xi1>, vector<96x512xf32>
    %120 = arith.addf %112, %119 : vector<96x512xf32>
    %121 = vector.broadcast %103 : vector<16x1xi32> to vector<16x512xi32>
    %122 = vector.broadcast %76 : vector<1x512xi32> to vector<16x512xi32>
    %123 = arith.cmpi eq, %121, %122 : vector<16x512xi32>
    %cst_33 = arith.constant 1.000000e+00 : f32
    %124 = vector.broadcast %cst_33 : f32 to vector<1x512xf32>
    %125 = arith.subf %124, %70 : vector<1x512xf32>
    %cst_34 = arith.constant 0.000000e+00 : f32
    %126 = vector.shape_cast %125 : vector<1x512xf32> to vector<1x512xf32>
    %127 = vector.broadcast %126 : vector<1x512xf32> to vector<16x512xf32>
    %128 = vector.broadcast %cst_34 : f32 to vector<16x512xf32>
    %129 = arith.select %123, %127, %128 : vector<16x512xi1>, vector<16x512xf32>
    %130 = vector.broadcast %103 : vector<16x1xi32> to vector<16x512xi32>
    %131 = vector.broadcast %83 : vector<1x512xi32> to vector<16x512xi32>
    %132 = arith.cmpi eq, %130, %131 : vector<16x512xi32>
    %cst_35 = arith.constant 0.000000e+00 : f32
    %133 = vector.shape_cast %70 : vector<1x512xf32> to vector<1x512xf32>
    %134 = vector.broadcast %133 : vector<1x512xf32> to vector<16x512xf32>
    %135 = vector.broadcast %cst_35 : f32 to vector<16x512xf32>
    %136 = arith.select %132, %134, %135 : vector<16x512xi1>, vector<16x512xf32>
    %137 = arith.addf %129, %136 : vector<16x512xf32>
    %c0_36 = arith.constant 0 : index
    %c0_37 = arith.constant 0 : index
    %138 = vector.load %arg1[%c0_36, %c0_37] : memref<48x96xf32, #tpu.memory_space<vmem>>, vector<48x96xf32>
    %cst_38 = arith.constant dense<0.000000e+00> : vector<48x512xf32>
    %139 = tpu.matmul %138, %120, %cst_38 {dimension_numbers = #tpu.dot_dimension_numbers<[1], [0], [0], [1], [0, 0, 1, 1], [], []>} : vector<48x96xf32>, vector<96x512xf32>, vector<48x512xf32> -> vector<48x512xf32>
    %140 = vector.extract_strided_slice %139 {offsets = [0, 0], sizes = [16, 512], strides = [1, 1]} : vector<48x512xf32> to vector<16x512xf32>
    %141 = arith.mulf %137, %140 : vector<16x512xf32>
    %cst_39 = arith.constant dense<0.000000e+00> : vector<512xf32>
    %142 = vector.multi_reduction <add>, %141, %cst_39 [0] : vector<16x512xf32> to vector<512xf32>
    %143 = vector.shape_cast %142 : vector<512xf32> to vector<1x512xf32>
    %cst_40 = arith.constant 0.000000e+00 : f32
    %cst_41 = arith.constant 1.000000e+00 : f32
    %144 = vector.broadcast %cst_40 : f32 to vector<1x512xf32>
    %145 = arith.maximumf %144, %143 : vector<1x512xf32>
    %146 = vector.broadcast %cst_41 : f32 to vector<1x512xf32>
    %147 = arith.minimumf %146, %145 : vector<1x512xf32>
    %c0_42 = arith.constant 0 : index
    %c0_43 = arith.constant 0 : index
    %148 = vector.load %arg3[%c0_42, %c0_43] : memref<3x512xf32, #tpu.memory_space<vmem>>, vector<1x512xf32>
    tpu.vector_store %arg3[%c0_42, %c0_43], %147 {strides = array<i32>} : memref<3x512xf32, #tpu.memory_space<vmem>>, vector<1x512xf32>,
    %149 = vector.extract_strided_slice %139 {offsets = [16, 0], sizes = [16, 512], strides = [1, 1]} : vector<48x512xf32> to vector<16x512xf32>
    %150 = arith.mulf %137, %149 : vector<16x512xf32>
    %cst_44 = arith.constant dense<0.000000e+00> : vector<512xf32>
    %151 = vector.multi_reduction <add>, %150, %cst_44 [0] : vector<16x512xf32> to vector<512xf32>
    %152 = vector.shape_cast %151 : vector<512xf32> to vector<1x512xf32>
    %cst_45 = arith.constant 0.000000e+00 : f32
    %cst_46 = arith.constant 1.000000e+00 : f32
    %153 = vector.broadcast %cst_45 : f32 to vector<1x512xf32>
    %154 = arith.maximumf %153, %152 : vector<1x512xf32>
    %155 = vector.broadcast %cst_46 : f32 to vector<1x512xf32>
    %156 = arith.minimumf %155, %154 : vector<1x512xf32>
    %c1_47 = arith.constant 1 : index
    %c0_48 = arith.constant 0 : index
    %157 = vector.load %arg3[%c1_47, %c0_48] : memref<3x512xf32, #tpu.memory_space<vmem>>, vector<1x512xf32>
    tpu.vector_store %arg3[%c1_47, %c0_48], %156 {strides = array<i32>} : memref<3x512xf32, #tpu.memory_space<vmem>>, vector<1x512xf32>,
    %158 = vector.extract_strided_slice %139 {offsets = [32, 0], sizes = [16, 512], strides = [1, 1]} : vector<48x512xf32> to vector<16x512xf32>
    %159 = arith.mulf %137, %158 : vector<16x512xf32>
    %cst_49 = arith.constant dense<0.000000e+00> : vector<512xf32>
    %160 = vector.multi_reduction <add>, %159, %cst_49 [0] : vector<16x512xf32> to vector<512xf32>
    %161 = vector.shape_cast %160 : vector<512xf32> to vector<1x512xf32>
    %cst_50 = arith.constant 0.000000e+00 : f32
    %cst_51 = arith.constant 1.000000e+00 : f32
    %162 = vector.broadcast %cst_50 : f32 to vector<1x512xf32>
    %163 = arith.maximumf %162, %161 : vector<1x512xf32>
    %164 = vector.broadcast %cst_51 : f32 to vector<1x512xf32>
    %165 = arith.minimumf %164, %163 : vector<1x512xf32>
    %c2_52 = arith.constant 2 : index
    %c0_53 = arith.constant 0 : index
    %166 = vector.load %arg3[%c2_52, %c0_53] : memref<3x512xf32, #tpu.memory_space<vmem>>, vector<1x512xf32>
    tpu.vector_store %arg3[%c2_52, %c0_53], %165 {strides = array<i32>} : memref<3x512xf32, #tpu.memory_space<vmem>>, vector<1x512xf32>,
    return
  }
  func.func @transform_0(%arg0: i32) -> (i32, i32) {
    %c0_i32 = arith.constant 0 : i32
    %c0_i32_0 = arith.constant 0 : i32
    %c0_i32_1 = arith.constant 0 : i32
    return %c0_i32, %c0_i32_0 : i32, i32
  }
  func.func @transform_1(%arg0: i32) -> (i32, i32) {
    %c0_i32 = arith.constant 0 : i32
    %c0_i32_0 = arith.constant 0 : i32
    return %c0_i32, %arg0 : i32, i32
  }
  func.func @transform_2(%arg0: i32) -> (i32, i32) {
    %c0_i32 = arith.constant 0 : i32
    %c0_i32_0 = arith.constant 0 : i32
    return %c0_i32, %arg0 : i32, i32
  }
}

</mosaic_0001>

<bundles_post_ra>
// kernel: tpu_custom_call.1
= control target key start
LH: loop header
LB: loop body
LE: loop exit
PB: predicated region body
PF: predicated region fallthrough
CT: control target
= control target key end

     0   :  { %7 = vsyncpa [#allocation3], 0  ;;  %s1972_s0 = inlined_call_operand.hbm [shape: f32[48,96], index: 0, kind: input, shape index: {}]   ;;  %s1973_s1 = inlined_call_operand.hbm [shape: f32[3,2048], index: 1, kind: input, shape index: {}]   ;;  %s1974_s2 = inlined_call_operand.hbm [shape: f32[3,2048], index: 2, kind: output, shape index: {}]  }
   0x1   :  { %8 = vsyncpa [#allocation6], 0 }
   0x2   :  { %10 = vsyncpa [#allocation6 + $0x1], 0 }
   0x3   :  { %11 = vsyncpa [#allocation4], 0 }
   0x4   :  { %13 = vsyncpa [#allocation4 + $0x1], 0  ;;  %s1323_s9 = smov 0   ;;  %s1325_s10 = smov 0  }
   0x5   :  { %s1327_s11 = smov 0   ;;  %s1329_s12 = smov 0  }
   0x6 LB: > { %s108_s15 = sshll.u32 %s1972_s0, 4  ;;  %s1347_s16 = sadd.s32 4294967295, %s1300_s12   ;;  %s1300_s12 = sphi %s1329_s12, %s1989_s12   ;;  %s1296_s11 = sphi %s1327_s11, %s1988_s11   ;;  %s1292_s10 = sphi %s1325_s10, %s1987_s10   ;;  %s1288_s9 = sphi %s1323_s9, %s1986_s9   ;;  %s109_s15 = int_to_ptr.hbm [resolvable:$true] %s108_s15 }
   0x7   : > { %p1055_p0 = scmp.ge.s32.totalorder %s1300_s12, 1  ;;  %p61_p1 = scmp.eq.s32.totalorder %s1347_s16, 0 }
   0x8   : > { %p97_p2 = scmp.lt.s32.totalorder %s1300_s12, 5  ;;  %s1302_s18 = smov [#allocation2]  }
   0x9   : > { %s110_s19 = sshll.u32 %s1302_s18, 4  ;;  %s1303_s20 = smov 128   ;;  %s111_s19 = int_to_ptr.vmem [resolvable:$true] %s110_s19 }
   0xa   : > { %p1352_p3 = pnand %p1055_p0, %p97_p2  ;;  %s1304_s21 = smov 8  }
   0xb   : > { %s1054_s22 = sadd.s32 4294967294, %s1300_s12   ;;  %s1362_s23 = sadd.s32 1, %s1300_s12  }
   0xc   : > { %p1114_p4 = pneg %p1352_p3  ;;  %s47_s24 = sadd.s32 1, %s1296_s11 }
   0xd   : > { %s44_s25 = ssub.s32 %s1300_s12, %s1362_s23  ;;  %p54_p6 = scmp.ne.s32.totalorder %s1296_s11, %s1292_s10 }
   0xe   : > { %p1115_p5 = pnand %p1114_p4, %p61_p1  ;;  %p45_p7 = scmp.eq.s32.totalorder %s44_s25, 0 }
   0xf   : > { %p55_p8 = scmp.eq.s32.totalorder %s1300_s12, 0  ;;  %p60_p9 = scmp.ne.s32.totalorder %s1292_s10, %s1288_s9 }
  0x10   : > { %1117 = dma.hbm_to_vmem [thread:$0]  (!%p1115_p5), %s109_s15, 768, %s111_s19, [#allocation3], %s1303_s20, %s1303_s20, %s1304_s21  }
  0x11   : > { %p84_p10 = scmp.eq.s32.totalorder %s1347_s16, 3  ;;  %p1378_p11 = por %p61_p1, %p60_p9 }
  0x12   : > { %s1374_s26 = scalar_select %p45_p7, %s1296_s11, %s47_s24  }
  0x13   : > { %p1382_p12 = por %p84_p10, %p54_p6  ;;  %p90_p13 = scmp.eq.s32.totalorder %s1054_s22, 3 }
  0x14   : > { %p56_p0 = por %p55_p8, %p54_p6  ;;  %s124_s29 = sand.u32 1, %s1296_s11  }
  0x15   : > { %p1387_p2 = por %p90_p13, %p60_p9  ;;  %p1127_p4 = scmp.lt.s32.totalorder %s1300_s12, 4 }
  0x16   : > { %s1058_s3 = sshll.u32 %s124_s29, 4  ;;  %s1100_s4 = sshll.u32 %s1300_s12, 4 }
  0x17   : > { %s133_s7 = scalar_lea.hbm %s1973_s1, %s1100_s4  ;;  %s128_s13 = scalar_lea.vmem [#allocation5], %s1058_s3 }
  0x18   : > { %s135_s8 = sshll.u32 %s133_s7, 4  ;;  %s137_s14 = sshll.u32 %s128_s13, 4  ;;  %s136_s8 = int_to_ptr.hbm [resolvable:$true] %s135_s8  ;;  %s138_s14 = int_to_ptr.vmem [resolvable:$true] %s137_s14 }
  0x19   : > { %p1396_p5 = pnand %p1127_p4, %p56_p0  ;;  %s125_s18 = scalar_lea.sflag [#allocation6], %s124_s29 }
  0x1a   : > { %s1200_s19 = sshra.s32 %s136_s8, 4  ;;  %s1207_s24 = scalar_lea.hbm %s1973_s1, 64  ;;  %s1201_s19 = int_to_ptr.hbm [resolvable:$true] %s1200_s19 }
  0x1b   : > { %s1202_s20 = scalar_lea.hbm %s1201_s19, 16  ;;  %p1204_p7 = pneg %p1396_p5 }
  0x1c   : > { %p1203_p6 = scmp.ne.s32.totalorder %s1201_s19, %s1202_s20  ;;  %p1208_p10 = scmp.lt.s32.totalorder %s1201_s19, %s1973_s1 }
  0x1d   : > { %p1209_p13 = scmp.lt.s32.totalorder %s1207_s24, %s1202_s20 }
  0x1e   : > { %p1205_p8 = pnand %p1204_p7, %p1203_p6 }
  0x1f   : > { %p1210_p0 = por %p1209_p13, %p1208_p10 }
  0x20   : > { %p1206_p9 = pneg %p1205_p8 }
  0x22   : > { %p1211_p4 = pnand %p1210_p0, %p1206_p9 }
  0x24   : > { %1214 = shalt.err (!%p1211_p4)
}
  0x25   : > { %1121 = dma.hbm_to_vmem [thread:$0]  (!%p1396_p5), %s136_s8, 256, %s138_s14, %s125_s18  }
  0x26   : > { %146 = sbr.rel (%p1352_p3) target bundleno = 360 (0x168), region = 28 }
  0x2b   : > { %1275 = dma.done.wait (%p61_p1), [#allocation3], 768  }
  0x2c   : > { %1277 = vsyncadd (%p61_p1), [#allocation3], 4294966528  ;;  %s1417_s29 = sand.u32 1, %s1292_s10  }
  0x2d   : > { %s1063_s4 = sshll.u32 %s1417_s29, 4  ;;  %s154_s5 = scalar_lea.sflag [#allocation6], %s1417_s29 }
  0x2e   : > { %s157_s6 = scalar_lea.vmem [#allocation5], %s1063_s4 }
  0x2f   : > { %1279 = dma.done.wait (%p1378_p11), %s154_s5, 256  }
  0x30   : > { %1281 = vsyncadd (%p1378_p11), %s154_s5, 4294967040  ;;  %v1427_v0 = vld [vmem:[%s157_s6] ss:$4 sm:$0xf]  ;;  %v1305_v28 = vmov 3   ;;  %v1306_v30 = vmov 5   ;;  %v266_v33 = vlaneseq }
  0x31   : > { %v1065_v1 = vld [vmem:[%s157_s6 + $0x1] ss:$4 sm:$0xf]  ;;  %v1429_v2 = vld [vmem:[%s157_s6 + $0x2] ss:$4 sm:$0xf] }
  0x32   : > { %v186_v3 = vand.u32 2147483647, %v1427_v0  ;;  %v1432_v4 = vand.u32 2147483647, %v1065_v1  ;;  %v1435_v5 = vand.u32 2147483647, %v1429_v2 }
  0x33   : > { %v204_v10 = vsub.f32 0.0, %v1429_v2  ;;  %vm197_vm4 = vcmp.ge.f32.partialorder %v1065_v1, 0.0  ;;  %v210_v12 = vsub.f32 0.0, %v1065_v1  ;;  %vm198_vm9 = vcmp.ge.f32.partialorder %v1429_v2, 0.0  ;;  %s1918_s17 = scalar_lea.vmem [#allocation7], %s1063_s4  ;;  %s1101_s27 = sshll.u32 %s1347_s16, 4 }
  0x34   : > { %vm189_vm0 = vcmp.ge.f32.partialorder %v186_v3, %v1432_v4  ;;  %vm190_vm1 = vcmp.ge.f32.partialorder %v186_v3, %v1435_v5  ;;  %vm192_vm2 = vcmp.ge.f32.partialorder %v1432_v4, %v1435_v5  ;;  %vm196_vm10 = vcmp.ge.f32.partialorder %v1427_v0, 0.0  ;;  %s967_s13 = scalar_lea.hbm %s1974_s2, %s1101_s27  ;;  %s969_s14 = sshll.u32 %s1918_s17, 4  ;;  %s970_s14 = int_to_ptr.vmem [resolvable:$true] %s969_s14 }
  0x35   : > { %vm1441_vm3 = vmand %vm189_vm0, %vm190_vm1  ;;  %v193_v7 = vsel %vm192_vm2, %v1432_v4, %v1435_v5  ;;  %v211_v14 = vsel %vm197_vm4, %v1429_v2, %v204_v10  ;;  %v200_v29 = vsel %vm197_vm4, 2, %v1305_v28  ;;  %v201_v31 = vsel %vm198_vm9, 4, %v1306_v30  ;;  %s971_s15 = sshll.u32 %s967_s13, 4  ;;  %s956_s16 = scalar_lea.sflag [#allocation4], %s1417_s29  ;;  %s972_s15 = int_to_ptr.hbm [resolvable:$true] %s971_s15 }
  0x36   : > { %v194_v8 = vsel %vm1441_vm3, %v186_v3, %v193_v7  ;;  %v212_v18 = vsel %vm192_vm2, %v211_v14, %v210_v12  ;;  %v1307_v34 = vmov 1   ;;  %v202_v36 = vsel %vm192_vm2, %v200_v29, %v201_v31  ;;  %s1244_s18 = sshra.s32 %s972_s15, 4  ;;  %s1250_s22 = scalar_lea.hbm %s1974_s2, 64  ;;  %s1245_s18 = int_to_ptr.hbm [resolvable:$true] %s1244_s18 }
  0x37   : > { %v195_v9 = vmax.f32 %v194_v8, 1e-12  ;;  %v213_v22 = vsel %vm1441_vm3, %v210_v12, %v212_v18  ;;  %v199_v35 = vsel %vm196_vm10, 0, %v1307_v34  ;;  %v1476_v39 = vshrl.u32 %v266_v33, 7  ;;  %s1246_s19 = scalar_lea.hbm %s1245_s18, 16  ;;  %p1251_p5 = scmp.lt.s32.totalorder %s1245_s18, %s1974_s2 }
  0x38   : > { %v203_v40 = vsel %vm1441_vm3, %v199_v35, %v202_v36  ;;  %p1247_p1 = scmp.ne.s32.totalorder %s1245_s18, %s1246_s19  ;;  %p1252_p6 = scmp.lt.s32.totalorder %s1250_s22, %s1246_s19 }
  0x39   : > { %1168 = vrcp.f32 %v195_v9  ;;  %v225_v15 = vand.u32 2147483648, %v195_v9  ;;  %vm219_vm5 = vweird.f32 %v195_v9  ;;  %v223_v17 = vand.u32 2147483647, %v195_v9 }
  0x3a   : > { %v263_v44 = vmul.u32 16, %v203_v40  ;;  %v278_v45 = vadd.s32 88, %v1476_v39  ;;  %v1482_v48 = vadd.s32 80, %v1476_v39  ;;  %v1485_v49 = vadd.s32 72, %v1476_v39  ;;  %p1248_p3 = pnand %p1247_p1, %p1382_p12  ;;  %p1253_p7 = por %p1252_p6, %p1251_p5 }
  0x3b   : > { %v226_v20 = vor.u32 1.1754944e-38, %v225_v15  ;;  %vm224_vm8 = vcmp.eq.f32.partialorder %v223_v17, 8.507059e+37  ;;  %v1488_v50 = vadd.s32 64, %v1476_v39  ;;  %v1491_v51 = vadd.s32 56, %v1476_v39 }
  0x3c   : > { %v1521_v12 = vadd.s32 40, %v1476_v39  ;;  %p1249_p11 = pneg %p1248_p3 }
  0x3e   : > { %p1254_p8 = pnand %p1253_p7, %p1249_p11 }
  0x3f   : > { %v1169_v11 = vpop.eup %1168 }
  0x40   : > { %v215_v13 = vmul.f32 %v1169_v11, %v195_v9  ;;  %vm220_vm6 = vweird.f32 %v1169_v11 }
  0x41   : > { %vm221_vm7 = vmor %vm219_vm5, %vm220_vm6 }
  0x42   : > { %v216_v16 = vsub.f32 1.0, %v215_v13 }
  0x44   : > { %v217_v19 = vmul.f32 %v1169_v11, %v216_v16 }
  0x46   : > { %v218_v21 = vadd.f32 %v1169_v11, %v217_v19 }
  0x48   : > { %v222_v23 = vsel %vm221_vm7, %v1169_v11, %v218_v21  ;;  %v1518_v11 = vadd.s32 48, %v1476_v39 }
  0x49   : > { %v1462_v24 = vsel %vm224_vm8, %v226_v20, %v222_v23 }
  0x4a   : > { %v232_v25 = vmul.f32 %v1462_v24, %v213_v22 }
  0x4c   : > { %v233_v26 = vadd.f32 1.0, %v232_v25 }
  0x4e   : > { %v234_v27 = vmul.f32 0.5, %v233_v26 }
  0x50   : > { %v237_v32 = vmul.f32 16.0, %v234_v27 }
  0x52   : > { %v1068_v37 = vadd.f32 -0.5, %v237_v32 }
  0x54   : > { %v240_v38 = vfloor.f32 %v1068_v37 }
  0x56   : > { %v242_v41 = vsub.f32 %v1068_v37, %v240_v38  ;;  %v1105_v42 = vcvt.f32.s32 %v240_v38 }
  0x58   : > { %vm254_vm11 = vcmp.gt.s32.totalorder %v1105_v42, 0  ;;  %v258_v43 = vadd.s32 1, %v1105_v42  ;;  %v331_v47 = vsub.f32 1.0, %v242_v41  ;;  %v1493_v54 = vperm.slane %v242_v41, 0 }
  0x59   : > { %v255_v46 = vsel %vm254_vm11, %v1105_v42, 0  ;;  %v1495_v55 = vperm.slane %v242_v41, 1  ;;  %v1497_v57 = vperm.slane %v242_v41, 2  ;;  %v1499_v58 = vperm.slane %v242_v41, 3 }
  0x5a   : > { %vm256_vm12 = vcmp.lt.s32.totalorder %v255_v46, 15  ;;  %vm259_vm13 = vcmp.gt.s32.totalorder %v258_v43, 0  ;;  %v1501_v60 = vperm.slane %v331_v47, 0  ;;  %v1503_v61 = vperm.slane %v331_v47, 1 }
  0x5b   : > { %v257_v52 = vsel %vm256_vm12, %v255_v46, 15  ;;  %v260_v53 = vsel %vm259_vm13, %v258_v43, 0  ;;  %v1505_v62 = vperm.slane %v331_v47, 2  ;;  %v1515_v9 = vperm.slane %v331_v47, 3 }
  0x5c   : > { %vm261_vm14 = vcmp.lt.s32.totalorder %v260_v53, 15  ;;  %v264_v56 = vadd.s32 %v263_v44, %v257_v52 }
  0x5d   : > { %v262_v59 = vsel %vm261_vm14, %v260_v53, 15 }
  0x5e   : > { %v265_v63 = vadd.s32 %v263_v44, %v262_v59  ;;  %v1507_v1 = vperm.slane %v264_v56, 0  ;;  %v1509_v3 = vperm.slane %v264_v56, 1  ;;  %v1511_v7 = vperm.slane %v264_v56, 2 }
  0x5f   : > { %v1513_v8 = vperm.slane %v264_v56, 3 }
  0x60   : > { %vm327_vm15 = vcmp.eq.s32.totalorder %v278_v45, %v1507_v1  ;;  %v1524_v13 = vperm.slane %v265_v63, 0  ;;  %vm328_vm0 = vcmp.eq.s32.totalorder %v278_v45, %v1509_v3  ;;  %v1527_v14 = vperm.slane %v265_v63, 1 }
  0x61   : > { %v385_v15 = vsel %vm327_vm15, %v1501_v60, 0.0  ;;  %v386_v16 = vsel %vm328_vm0, %v1503_v61, 0.0  ;;  %vm329_vm1 = vcmp.eq.s32.totalorder %v278_v45, %v1511_v7  ;;  %v1532_v17 = vperm.slane %v265_v63, 2 }
  0x62   : > { %vm437_vm4 = vcmp.eq.s32.totalorder %v278_v45, %v1524_v13  ;;  %vm438_vm5 = vcmp.eq.s32.totalorder %v278_v45, %v1527_v14  ;;  %v387_v18 = vsel %vm329_vm1, %v1505_v62, 0.0  ;;  %vm330_vm6 = vcmp.eq.s32.totalorder %v278_v45, %v1513_v8 }
  0x63   : > { %v494_v19 = vsel %vm437_vm4, %v1493_v54, 0.0  ;;  %v495_v20 = vsel %vm438_vm5, %v1495_v55, 0.0  ;;  %vm439_vm7 = vcmp.eq.s32.totalorder %v278_v45, %v1532_v17  ;;  %v388_v21 = vsel %vm330_vm6, %v1515_v9, 0.0 }
  0x64   : > { %v542_v22 = vadd.f32 %v494_v19, %v385_v15  ;;  %v543_v23 = vadd.f32 %v495_v20, %v386_v16  ;;  %v496_v25 = vsel %vm439_vm7, %v1497_v57, 0.0  ;;  %v1543_v26 = vperm.slane %v265_v63, 3 }
  0x65   : > { %v544_v27 = vadd.f32 %v496_v25, %v387_v18  ;;  %vm323_vm8 = vcmp.eq.s32.totalorder %v1482_v48, %v1507_v1  ;;  %vm433_vm11 = vcmp.eq.s32.totalorder %v1482_v48, %v1524_v13  ;;  %vm324_vm12 = vcmp.eq.s32.totalorder %v1482_v48, %v1509_v3 }
  0x66   : > { %642 = vmatpush.msra.mxu0 %v542_v22  ;;  %677 = vmatpush.msra.mxu1 %v543_v23  ;;  %vm440_vm13 = vcmp.eq.s32.totalorder %v278_v45, %v1543_v26  ;;  %v381_v28 = vsel %vm323_vm8, %v1501_v60, 0.0  ;;  %v490_v29 = vsel %vm433_vm11, %v1493_v54, 0.0  ;;  %v382_v30 = vsel %vm324_vm12, %v1503_v61, 0.0 }
  0x67   : > { %712 = vmatpush.msra.mxu2 %v544_v27  ;;  %v497_v31 = vsel %vm440_vm13, %v1499_v58, 0.0  ;;  %v538_v32 = vadd.f32 %v490_v29, %v381_v28  ;;  %vm434_vm14 = vcmp.eq.s32.totalorder %v1482_v48, %v1527_v14  ;;  %vm325_vm15 = vcmp.eq.s32.totalorder %v1482_v48, %v1511_v7 }
  0x68   : > { %v545_v34 = vadd.f32 %v497_v31, %v388_v21  ;;  %v491_v35 = vsel %vm434_vm14, %v1495_v55, 0.0  ;;  %v383_v36 = vsel %vm325_vm15, %v1505_v62, 0.0  ;;  %vm435_vm0 = vcmp.eq.s32.totalorder %v1482_v48, %v1532_v17 }
  0x69   : > { %643 = vmatpush.msra.mxu0 %v538_v32  ;;  %v539_v37 = vadd.f32 %v491_v35, %v382_v30  ;;  %v492_v38 = vsel %vm435_vm0, %v1497_v57, 0.0  ;;  %vm326_vm1 = vcmp.eq.s32.totalorder %v1482_v48, %v1513_v8  ;;  %vm436_vm4 = vcmp.eq.s32.totalorder %v1482_v48, %v1543_v26 }
  0x6a   : > { %747 = vmatpush.msra.mxu3 %v545_v34  ;;  %v540_v40 = vadd.f32 %v492_v38, %v383_v36  ;;  %v384_v41 = vsel %vm326_vm1, %v1515_v9, 0.0  ;;  %v493_v42 = vsel %vm436_vm4, %v1499_v58, 0.0  ;;  %vm319_vm5 = vcmp.eq.s32.totalorder %v1485_v49, %v1507_v1 }
  0x6b   : > { %678 = vmatpush.msra.mxu1 %v539_v37  ;;  %v541_v43 = vadd.f32 %v493_v42, %v384_v41  ;;  %v377_v44 = vsel %vm319_vm5, %v1501_v60, 0.0  ;;  %vm429_vm6 = vcmp.eq.s32.totalorder %v1485_v49, %v1524_v13  ;;  %vm320_vm7 = vcmp.eq.s32.totalorder %v1485_v49, %v1509_v3 }
  0x6c   : > { %713 = vmatpush.msra.mxu2 %v540_v40  ;;  %v486_v45 = vsel %vm429_vm6, %v1493_v54, 0.0  ;;  %v378_v46 = vsel %vm320_vm7, %v1503_v61, 0.0  ;;  %vm430_vm8 = vcmp.eq.s32.totalorder %v1485_v49, %v1527_v14  ;;  %vm321_vm11 = vcmp.eq.s32.totalorder %v1485_v49, %v1511_v7 }
  0x6d   : > { %748 = vmatpush.msra.mxu3 %v541_v43  ;;  %v534_v47 = vadd.f32 %v486_v45, %v377_v44  ;;  %v487_v48 = vsel %vm430_vm8, %v1495_v55, 0.0  ;;  %v379_v52 = vsel %vm321_vm11, %v1505_v62, 0.0  ;;  %vm431_vm12 = vcmp.eq.s32.totalorder %v1485_v49, %v1532_v17 }
  0x6e   : > { %v535_v53 = vadd.f32 %v487_v48, %v378_v46  ;;  %v488_v56 = vsel %vm431_vm12, %v1497_v57, 0.0  ;;  %vm322_vm13 = vcmp.eq.s32.totalorder %v1485_v49, %v1513_v8  ;;  %vm432_vm14 = vcmp.eq.s32.totalorder %v1485_v49, %v1543_v26 }
  0x6f   : > { %644 = vmatpush.msra.mxu0 %v534_v47  ;;  %v536_v59 = vadd.f32 %v488_v56, %v379_v52  ;;  %v380_v63 = vsel %vm322_vm13, %v1515_v9, 0.0  ;;  %v489_v15 = vsel %vm432_vm14, %v1499_v58, 0.0  ;;  %vm315_vm15 = vcmp.eq.s32.totalorder %v1488_v50, %v1507_v1 }
  0x70   : > { %679 = vmatpush.msra.mxu1 %v535_v53  ;;  %v537_v16 = vadd.f32 %v489_v15, %v380_v63  ;;  %v373_v18 = vsel %vm315_vm15, %v1501_v60, 0.0  ;;  %vm425_vm0 = vcmp.eq.s32.totalorder %v1488_v50, %v1524_v13  ;;  %vm316_vm1 = vcmp.eq.s32.totalorder %v1488_v50, %v1509_v3 }
  0x71   : > { %714 = vmatpush.msra.mxu2 %v536_v59  ;;  %v482_v49 = vsel %vm425_vm0, %v1493_v54, 0.0  ;;  %v374_v19 = vsel %vm316_vm1, %v1503_v61, 0.0  ;;  %vm426_vm4 = vcmp.eq.s32.totalorder %v1488_v50, %v1527_v14  ;;  %vm317_vm5 = vcmp.eq.s32.totalorder %v1488_v50, %v1511_v7 }
  0x72   : > { %749 = vmatpush.msra.mxu3 %v537_v16  ;;  %v530_v20 = vadd.f32 %v482_v49, %v373_v18  ;;  %v483_v21 = vsel %vm426_vm4, %v1495_v55, 0.0  ;;  %v375_v22 = vsel %vm317_vm5, %v1505_v62, 0.0  ;;  %vm427_vm6 = vcmp.eq.s32.totalorder %v1488_v50, %v1532_v17 }
  0x73   : > { %v531_v23 = vadd.f32 %v483_v21, %v374_v19  ;;  %v484_v25 = vsel %vm427_vm6, %v1497_v57, 0.0  ;;  %vm318_vm7 = vcmp.eq.s32.totalorder %v1488_v50, %v1513_v8  ;;  %vm428_vm8 = vcmp.eq.s32.totalorder %v1488_v50, %v1543_v26 }
  0x74   : > { %645 = vmatpush.msra.mxu0 %v530_v20  ;;  %v532_v27 = vadd.f32 %v484_v25, %v375_v22  ;;  %v376_v28 = vsel %vm318_vm7, %v1515_v9, 0.0  ;;  %v485_v29 = vsel %vm428_vm8, %v1499_v58, 0.0  ;;  %vm311_vm11 = vcmp.eq.s32.totalorder %v1491_v51, %v1507_v1 }
  0x75   : > { %680 = vmatpush.msra.mxu1 %v531_v23  ;;  %v533_v30 = vadd.f32 %v485_v29, %v376_v28  ;;  %v369_v31 = vsel %vm311_vm11, %v1501_v60, 0.0  ;;  %vm421_vm12 = vcmp.eq.s32.totalorder %v1491_v51, %v1524_v13  ;;  %vm312_vm13 = vcmp.eq.s32.totalorder %v1491_v51, %v1509_v3 }
  0x76   : > { %715 = vmatpush.msra.mxu2 %v532_v27  ;;  %v478_v50 = vsel %vm421_vm12, %v1493_v54, 0.0  ;;  %v370_v32 = vsel %vm312_vm13, %v1503_v61, 0.0  ;;  %vm422_vm14 = vcmp.eq.s32.totalorder %v1491_v51, %v1527_v14  ;;  %vm313_vm15 = vcmp.eq.s32.totalorder %v1491_v51, %v1511_v7 }
  0x77   : > { %750 = vmatpush.msra.mxu3 %v533_v30  ;;  %v526_v34 = vadd.f32 %v478_v50, %v369_v31  ;;  %v479_v35 = vsel %vm422_vm14, %v1495_v55, 0.0  ;;  %v371_v36 = vsel %vm313_vm15, %v1505_v62, 0.0  ;;  %vm423_vm0 = vcmp.eq.s32.totalorder %v1491_v51, %v1532_v17 }
  0x78   : > { %v527_v37 = vadd.f32 %v479_v35, %v370_v32  ;;  %v480_v38 = vsel %vm423_vm0, %v1497_v57, 0.0  ;;  %vm314_vm1 = vcmp.eq.s32.totalorder %v1491_v51, %v1513_v8  ;;  %vm424_vm4 = vcmp.eq.s32.totalorder %v1491_v51, %v1543_v26 }
  0x79   : > { %646 = vmatpush.msra.mxu0 %v526_v34  ;;  %v528_v40 = vadd.f32 %v480_v38, %v371_v36  ;;  %v372_v41 = vsel %vm314_vm1, %v1515_v9, 0.0  ;;  %v481_v42 = vsel %vm424_vm4, %v1499_v58, 0.0  ;;  %vm307_vm5 = vcmp.eq.s32.totalorder %v1518_v11, %v1507_v1 }
  0x7a   : > { %681 = vmatpush.msra.mxu1 %v527_v37  ;;  %v529_v43 = vadd.f32 %v481_v42, %v372_v41  ;;  %v365_v44 = vsel %vm307_vm5, %v1501_v60, 0.0  ;;  %vm417_vm6 = vcmp.eq.s32.totalorder %v1518_v11, %v1524_v13  ;;  %vm308_vm7 = vcmp.eq.s32.totalorder %v1518_v11, %v1509_v3 }
  0x7b   : > { %716 = vmatpush.msra.mxu2 %v528_v40  ;;  %v474_v51 = vsel %vm417_vm6, %v1493_v54, 0.0  ;;  %v366_v45 = vsel %vm308_vm7, %v1503_v61, 0.0  ;;  %vm418_vm8 = vcmp.eq.s32.totalorder %v1518_v11, %v1527_v14  ;;  %vm309_vm11 = vcmp.eq.s32.totalorder %v1518_v11, %v1511_v7 }
  0x7c   : > { %751 = vmatpush.msra.mxu3 %v529_v43  ;;  %v522_v46 = vadd.f32 %v474_v51, %v365_v44  ;;  %v475_v47 = vsel %vm418_vm8, %v1495_v55, 0.0  ;;  %v367_v48 = vsel %vm309_vm11, %v1505_v62, 0.0  ;;  %vm419_vm12 = vcmp.eq.s32.totalorder %v1518_v11, %v1532_v17 }
  0x7d   : > { %v523_v52 = vadd.f32 %v475_v47, %v366_v45  ;;  %v476_v53 = vsel %vm419_vm12, %v1497_v57, 0.0  ;;  %vm310_vm13 = vcmp.eq.s32.totalorder %v1518_v11, %v1513_v8  ;;  %vm420_vm14 = vcmp.eq.s32.totalorder %v1518_v11, %v1543_v26 }
  0x7e   : > { %647 = vmatpush.msra.mxu0 %v522_v46  ;;  %v524_v56 = vadd.f32 %v476_v53, %v367_v48  ;;  %v368_v59 = vsel %vm310_vm13, %v1515_v9, 0.0  ;;  %v477_v63 = vsel %vm420_vm14, %v1499_v58, 0.0  ;;  %vm303_vm15 = vcmp.eq.s32.totalorder %v1521_v12, %v1507_v1 }
  0x7f   : > { %682 = vmatpush.msra.mxu1 %v523_v52  ;;  %v525_v15 = vadd.f32 %v477_v63, %v368_v59  ;;  %v361_v16 = vsel %vm303_vm15, %v1501_v60, 0.0  ;;  %vm413_vm0 = vcmp.eq.s32.totalorder %v1521_v12, %v1524_v13  ;;  %vm304_vm1 = vcmp.eq.s32.totalorder %v1521_v12, %v1509_v3 }
  0x80   : > { %717 = vmatpush.msra.mxu2 %v524_v56  ;;  %v470_v11 = vsel %vm413_vm0, %v1493_v54, 0.0  ;;  %v362_v18 = vsel %vm304_vm1, %v1503_v61, 0.0  ;;  %vm414_vm4 = vcmp.eq.s32.totalorder %v1521_v12, %v1527_v14  ;;  %vm305_vm5 = vcmp.eq.s32.totalorder %v1521_v12, %v1511_v7 }
  0x81   : > { %752 = vmatpush.msra.mxu3 %v525_v15  ;;  %v518_v49 = vadd.f32 %v470_v11, %v361_v16  ;;  %v471_v19 = vsel %vm414_vm4, %v1495_v55, 0.0  ;;  %v363_v20 = vsel %vm305_vm5, %v1505_v62, 0.0  ;;  %vm415_vm6 = vcmp.eq.s32.totalorder %v1521_v12, %v1532_v17 }
  0x82   : > { %v519_v21 = vadd.f32 %v471_v19, %v362_v18  ;;  %v472_v22 = vsel %vm415_vm6, %v1497_v57, 0.0  ;;  %vm306_vm7 = vcmp.eq.s32.totalorder %v1521_v12, %v1513_v8  ;;  %vm416_vm8 = vcmp.eq.s32.totalorder %v1521_v12, %v1543_v26 }
  0x83   : > { %648 = vmatpush.msra.mxu0 %v518_v49  ;;  %v520_v23 = vadd.f32 %v472_v22, %v363_v20  ;;  %v364_v25 = vsel %vm306_vm7, %v1515_v9, 0.0  ;;  %v473_v27 = vsel %vm416_vm8, %v1499_v58, 0.0  ;;  %v271_v28 = vadd.s32 32, %v1476_v39 }
  0x84   : > { %683 = vmatpush.msra.mxu1 %v519_v21  ;;  %v521_v29 = vadd.f32 %v473_v27, %v364_v25  ;;  %v270_v30 = vadd.s32 24, %v1476_v39  ;;  %v1694_v31 = vadd.s32 16, %v1476_v39  ;;  %v1697_v50 = vadd.s32 8, %v1476_v39 }
  0x85   : > { %718 = vmatpush.msra.mxu2 %v520_v23  ;;  %vm299_vm11 = vcmp.eq.s32.totalorder %v271_v28, %v1507_v1  ;;  %vm409_vm12 = vcmp.eq.s32.totalorder %v271_v28, %v1524_v13  ;;  %vm300_vm13 = vcmp.eq.s32.totalorder %v271_v28, %v1509_v3  ;;  %vm410_vm14 = vcmp.eq.s32.totalorder %v271_v28, %v1527_v14 }
  0x86   : > { %753 = vmatpush.msra.mxu3 %v521_v29  ;;  %v357_v12 = vsel %vm299_vm11, %v1501_v60, 0.0  ;;  %v466_v32 = vsel %vm409_vm12, %v1493_v54, 0.0  ;;  %v358_v34 = vsel %vm300_vm13, %v1503_v61, 0.0  ;;  %v467_v35 = vsel %vm410_vm14, %v1495_v55, 0.0 }
  0x87   : > { %v514_v36 = vadd.f32 %v466_v32, %v357_v12  ;;  %v515_v37 = vadd.f32 %v467_v35, %v358_v34  ;;  %vm301_vm15 = vcmp.eq.s32.totalorder %v271_v28, %v1511_v7  ;;  %vm411_vm0 = vcmp.eq.s32.totalorder %v271_v28, %v1532_v17 }
  0x88   : > { %v359_v38 = vsel %vm301_vm15, %v1505_v62, 0.0  ;;  %v468_v40 = vsel %vm411_vm0, %v1497_v57, 0.0  ;;  %vm302_vm1 = vcmp.eq.s32.totalorder %v271_v28, %v1513_v8  ;;  %vm412_vm4 = vcmp.eq.s32.totalorder %v271_v28, %v1543_v26 }
  0x89   : > { %649 = vmatpush.msra.mxu0 %v514_v36  ;;  %684 = vmatpush.msra.mxu1 %v515_v37  ;;  %v516_v41 = vadd.f32 %v468_v40, %v359_v38  ;;  %v360_v42 = vsel %vm302_vm1, %v1515_v9, 0.0  ;;  %v469_v43 = vsel %vm412_vm4, %v1499_v58, 0.0  ;;  %vm295_vm5 = vcmp.eq.s32.totalorder %v270_v30, %v1507_v1 }
  0x8a   : > { %v517_v44 = vadd.f32 %v469_v43, %v360_v42  ;;  %v353_v51 = vsel %vm295_vm5, %v1501_v60, 0.0  ;;  %vm405_vm6 = vcmp.eq.s32.totalorder %v270_v30, %v1524_v13  ;;  %vm296_vm7 = vcmp.eq.s32.totalorder %v270_v30, %v1509_v3 }
  0x8b   : > { %719 = vmatpush.msra.mxu2 %v516_v41  ;;  %v462_v45 = vsel %vm405_vm6, %v1493_v54, 0.0  ;;  %v354_v46 = vsel %vm296_vm7, %v1503_v61, 0.0  ;;  %vm406_vm8 = vcmp.eq.s32.totalorder %v270_v30, %v1527_v14  ;;  %vm297_vm11 = vcmp.eq.s32.totalorder %v270_v30, %v1511_v7 }
  0x8c   : > { %754 = vmatpush.msra.mxu3 %v517_v44  ;;  %v510_v47 = vadd.f32 %v462_v45, %v353_v51  ;;  %v463_v48 = vsel %vm406_vm8, %v1495_v55, 0.0  ;;  %v355_v52 = vsel %vm297_vm11, %v1505_v62, 0.0  ;;  %vm407_vm12 = vcmp.eq.s32.totalorder %v270_v30, %v1532_v17 }
  0x8d   : > { %v511_v53 = vadd.f32 %v463_v48, %v354_v46  ;;  %v464_v56 = vsel %vm407_vm12, %v1497_v57, 0.0  ;;  %vm298_vm13 = vcmp.eq.s32.totalorder %v270_v30, %v1513_v8  ;;  %vm408_vm14 = vcmp.eq.s32.totalorder %v270_v30, %v1543_v26 }
  0x8e   : > { %650 = vmatpush.msra.mxu0 %v510_v47  ;;  %v512_v59 = vadd.f32 %v464_v56, %v355_v52  ;;  %v356_v63 = vsel %vm298_vm13, %v1515_v9, 0.0  ;;  %v465_v15 = vsel %vm408_vm14, %v1499_v58, 0.0  ;;  %vm291_vm15 = vcmp.eq.s32.totalorder %v1694_v31, %v1507_v1 }
  0x8f   : > { %685 = vmatpush.msra.mxu1 %v511_v53  ;;  %v513_v16 = vadd.f32 %v465_v15, %v356_v63  ;;  %v349_v11 = vsel %vm291_vm15, %v1501_v60, 0.0  ;;  %vm401_vm0 = vcmp.eq.s32.totalorder %v1694_v31, %v1524_v13  ;;  %vm292_vm1 = vcmp.eq.s32.totalorder %v1694_v31, %v1509_v3 }
  0x90   : > { %720 = vmatpush.msra.mxu2 %v512_v59  ;;  %v458_v18 = vsel %vm401_vm0, %v1493_v54, 0.0  ;;  %v350_v49 = vsel %vm292_vm1, %v1503_v61, 0.0  ;;  %vm402_vm4 = vcmp.eq.s32.totalorder %v1694_v31, %v1527_v14  ;;  %vm293_vm5 = vcmp.eq.s32.totalorder %v1694_v31, %v1511_v7 }
  0x91   : > { %755 = vmatpush.msra.mxu3 %v513_v16  ;;  %v506_v19 = vadd.f32 %v458_v18, %v349_v11  ;;  %v459_v20 = vsel %vm402_vm4, %v1495_v55, 0.0  ;;  %v351_v21 = vsel %vm293_vm5, %v1505_v62, 0.0  ;;  %vm403_vm6 = vcmp.eq.s32.totalorder %v1694_v31, %v1532_v17 }
  0x92   : > { %v507_v22 = vadd.f32 %v459_v20, %v350_v49  ;;  %v460_v23 = vsel %vm403_vm6, %v1497_v57, 0.0  ;;  %vm294_vm7 = vcmp.eq.s32.totalorder %v1694_v31, %v1513_v8  ;;  %vm404_vm8 = vcmp.eq.s32.totalorder %v1694_v31, %v1543_v26 }
  0x93   : > { %651 = vmatpush.msra.mxu0 %v506_v19  ;;  %v508_v25 = vadd.f32 %v460_v23, %v351_v21  ;;  %v352_v27 = vsel %vm294_vm7, %v1515_v9, 0.0  ;;  %v461_v28 = vsel %vm404_vm8, %v1499_v58, 0.0  ;;  %vm287_vm11 = vcmp.eq.s32.totalorder %v1697_v50, %v1507_v1 }
  0x94   : > { %686 = vmatpush.msra.mxu1 %v507_v22  ;;  %v509_v29 = vadd.f32 %v461_v28, %v352_v27  ;;  %v345_v30 = vsel %vm287_vm11, %v1501_v60, 0.0  ;;  %vm397_vm12 = vcmp.eq.s32.totalorder %v1697_v50, %v1524_v13  ;;  %vm288_vm13 = vcmp.eq.s32.totalorder %v1697_v50, %v1509_v3 }
  0x95   : > { %721 = vmatpush.msra.mxu2 %v508_v25  ;;  %v454_v31 = vsel %vm397_vm12, %v1493_v54, 0.0  ;;  %v346_v12 = vsel %vm288_vm13, %v1503_v61, 0.0  ;;  %vm398_vm14 = vcmp.eq.s32.totalorder %v1697_v50, %v1527_v14  ;;  %vm289_vm15 = vcmp.eq.s32.totalorder %v1697_v50, %v1511_v7 }
  0x96   : > { %756 = vmatpush.msra.mxu3 %v509_v29  ;;  %v502_v32 = vadd.f32 %v454_v31, %v345_v30  ;;  %v455_v34 = vsel %vm398_vm14, %v1495_v55, 0.0  ;;  %v347_v35 = vsel %vm289_vm15, %v1505_v62, 0.0  ;;  %vm399_vm0 = vcmp.eq.s32.totalorder %v1697_v50, %v1532_v17 }
  0x97   : > { %v503_v36 = vadd.f32 %v455_v34, %v346_v12  ;;  %v456_v37 = vsel %vm399_vm0, %v1497_v57, 0.0  ;;  %vm290_vm1 = vcmp.eq.s32.totalorder %v1697_v50, %v1513_v8  ;;  %vm400_vm4 = vcmp.eq.s32.totalorder %v1697_v50, %v1543_v26 }
  0x98   : > { %652 = vmatpush.msra.mxu0 %v502_v32  ;;  %v504_v38 = vadd.f32 %v456_v37, %v347_v35  ;;  %v348_v40 = vsel %vm290_vm1, %v1515_v9, 0.0  ;;  %v457_v41 = vsel %vm400_vm4, %v1499_v58, 0.0  ;;  %vm283_vm5 = vcmp.eq.s32.totalorder %v1476_v39, %v1507_v1 }
  0x99   : > { %687 = vmatpush.msra.mxu1 %v503_v36  ;;  %v505_v42 = vadd.f32 %v457_v41, %v348_v40  ;;  %v341_v43 = vsel %vm283_vm5, %v1501_v60, 0.0  ;;  %vm393_vm6 = vcmp.eq.s32.totalorder %v1476_v39, %v1524_v13  ;;  %vm284_vm7 = vcmp.eq.s32.totalorder %v1476_v39, %v1509_v3  ;;  %v613_v3 = vld [vmem:[#allocation2] sm:$0xff] }
  0x9a   : > { %722 = vmatpush.msra.mxu2 %v504_v38  ;;  %v450_v44 = vsel %vm393_vm6, %v1493_v54, 0.0  ;;  %v342_v51 = vsel %vm284_vm7, %v1503_v61, 0.0  ;;  %vm394_vm8 = vcmp.eq.s32.totalorder %v1476_v39, %v1527_v14  ;;  %vm285_vm11 = vcmp.eq.s32.totalorder %v1476_v39, %v1511_v7  ;;  %v618_v14 = vld [vmem:[#allocation2 + $0x28] sm:$0xff] }
  0x9b   : > { %757 = vmatpush.msra.mxu3 %v505_v42  ;;  %v498_v1 = vadd.f32 %v450_v44, %v341_v43  ;;  %v451_v60 = vsel %vm394_vm8, %v1495_v55, 0.0  ;;  %v343_v13 = vsel %vm285_vm11, %v1505_v62, 0.0  ;;  %vm395_vm12 = vcmp.eq.s32.totalorder %v1476_v39, %v1532_v17 }
  0x9c   : > { %v499_v45 = vadd.f32 %v451_v60, %v342_v51  ;;  %v452_v54 = vsel %vm395_vm12, %v1497_v57, 0.0  ;;  %vm286_vm13 = vcmp.eq.s32.totalorder %v1476_v39, %v1513_v8  ;;  %vm396_vm14 = vcmp.eq.s32.totalorder %v1476_v39, %v1543_v26  ;;  %v614_v57 = vld [vmem:[#allocation2 + $0x8] sm:$0xff]  ;;  %v616_v8 = vld [vmem:[#allocation2 + $0x18] sm:$0xff] }
  0x9d   : > { %653 = vmatpush.msra.mxu0 %v498_v1  ;;  %v500_v61 = vadd.f32 %v452_v54, %v343_v13  ;;  %v344_v7 = vsel %vm286_vm13, %v1515_v9, 0.0  ;;  %v453_v55 = vsel %vm396_vm14, %v1499_v58, 0.0  ;;  %vm619_vm15 = vcmask 785408   ;;  %v615_v58 = vld [vmem:[#allocation2 + $0x10] sm:$0xff]  ;;  %v617_v9 = vld [vmem:[#allocation2 + $0x20] sm:$0xff] }
  0x9e   : > { %688 = vmatpush.msra.mxu1 %v499_v45  ;;  %v501_v62 = vadd.f32 %v453_v55, %v344_v7  ;;  %1069 = vmatmul.msk.f32.vlgmr.msra.gmra.mxu0 %vm619_vm15, %v613_v3  ;;  %v206_v17 = vsub.f32 0.0, %v1427_v0  ;;  %v205_v46 = vsel %vm196_vm10, %v204_v10, %v1429_v2 }
  0x9f   : > { %723 = vmatpush.msra.mxu2 %v500_v61  ;;  %1075 = vmatmul.msk.f32.vlgmr.msra.gmra.mxu1 %vm619_vm15, %v613_v3 }
  0xa0   : > { %758 = vmatpush.msra.mxu3 %v501_v62  ;;  %1081 = vmatmul.msk.f32.vlgmr.msra.gmra.mxu2 %vm619_vm15, %v613_v3  ;;  %v207_v26 = vsel %vm198_vm9, %v1427_v0, %v206_v17 }
  0xa1   : > { %1087 = vmatmul.msk.f32.vlgmr.msra.gmra.mxu3 %vm619_vm15, %v613_v3  ;;  %v208_v47 = vsel %vm192_vm2, %v1427_v0, %v207_v26 }
  0xa2   : > { %v209_v48 = vsel %vm1441_vm3, %v205_v46, %v208_v47 }
  0xa3   : > { %v229_v52 = vmul.f32 %v1462_v24, %v209_v48 }
  0xa5   : > { %v230_v53 = vadd.f32 1.0, %v229_v52 }
  0xa6   : > { %1070 = vmatmul.msk.f32.gmra.mxu0 %vm619_vm15, %v614_v57 }
  0xa7   : > { %1076 = vmatmul.msk.f32.gmra.mxu1 %vm619_vm15, %v614_v57  ;;  %v231_v56 = vmul.f32 0.5, %v230_v53 }
  0xa8   : > { %1082 = vmatmul.msk.f32.gmra.mxu2 %vm619_vm15, %v614_v57 }
  0xa9   : > { %1088 = vmatmul.msk.f32.gmra.mxu3 %vm619_vm15, %v614_v57  ;;  %v235_v59 = vmul.f32 16.0, %v231_v56 }
  0xab   : > { %v1067_v63 = vadd.f32 -0.5, %v235_v59 }
  0xad   : > { %v239_v15 = vfloor.f32 %v1067_v63 }
  0xae   : > { %1071 = vmatmul.msk.f32.gmra.mxu0 %vm619_vm15, %v615_v58 }
  0xaf   : > { %1077 = vmatmul.msk.f32.gmra.mxu1 %vm619_vm15, %v615_v58  ;;  %v1103_v16 = vcvt.f32.s32 %v239_v15  ;;  %v1843_v4 = vsub.f32 %v1067_v63, %v239_v15 }
  0xb0   : > { %1083 = vmatmul.msk.f32.gmra.mxu2 %vm619_vm15, %v615_v58 }
  0xb1   : > { %1089 = vmatmul.msk.f32.gmra.mxu3 %vm619_vm15, %v615_v58  ;;  %v248_v11 = vadd.s32 1, %v1103_v16  ;;  %vm244_vm9 = vcmp.gt.s32.totalorder %v1103_v16, 0  ;;  %v558_v24 = vsub.f32 1.0, %v1843_v4  ;;  %v589_v19 = vperm.slane %v1843_v4, 0 }
  0xb2   : > { %v245_v2 = vsel %vm244_vm9, %v1103_v16, 0  ;;  %v590_v27 = vperm.slane %v1843_v4, 1  ;;  %v591_v44 = vperm.slane %v1843_v4, 2  ;;  %v592_v45 = vperm.slane %v1843_v4, 3 }
  0xb3   : > { %vm249_vm0 = vcmp.gt.s32.totalorder %v248_v11, 0  ;;  %vm246_vm10 = vcmp.lt.s32.totalorder %v245_v2, 15  ;;  %v560_v49 = vperm.slane %v558_v24, 0  ;;  %v561_v25 = vperm.slane %v558_v24, 1 }
  0xb4   : > { %v250_v10 = vsel %vm249_vm0, %v248_v11, 0  ;;  %v247_v0 = vsel %vm246_vm10, %v245_v2, 15  ;;  %v562_v41 = vperm.slane %v558_v24, 2  ;;  %v563_v51 = vperm.slane %v558_v24, 3 }
  0xb5   : > { %vm251_vm1 = vcmp.lt.s32.totalorder %v250_v10, 15  ;;  %v546_v6 = vperm.slane %v247_v0, 0  ;;  %v547_v20 = vperm.slane %v247_v0, 1  ;;  %v548_v31 = vperm.slane %v247_v0, 2 }
  0xb6   : > { %1072 = vmatmul.msk.f32.gmra.mxu0 %vm619_vm15, %v616_v8  ;;  %v252_v5 = vsel %vm251_vm1, %v250_v10, 15  ;;  %v549_v32 = vperm.slane %v247_v0, 3 }
  0xb7   : > { %1078 = vmatmul.msk.f32.gmra.mxu1 %vm619_vm15, %v616_v8  ;;  %v576_v18 = vperm.slane %v252_v5, 0  ;;  %vm550_vm2 = vcmp.eq.s32.totalorder %v1476_v39, %v546_v6  ;;  %v577_v21 = vperm.slane %v252_v5, 1  ;;  %vm554_vm4 = vcmp.eq.s32.totalorder %v1697_v50, %v546_v6 }
  0xb8   : > { %1084 = vmatmul.msk.f32.gmra.mxu2 %vm619_vm15, %v616_v8  ;;  %v568_v22 = vsel %vm550_vm2, %v560_v49, 0.0  ;;  %vm551_vm6 = vcmp.eq.s32.totalorder %v1476_v39, %v547_v20  ;;  %vm555_vm8 = vcmp.eq.s32.totalorder %v1697_v50, %v547_v20  ;;  %v578_v12 = vperm.slane %v252_v5, 2 }
  0xb9   : > { %1090 = vmatmul.msk.f32.gmra.mxu3 %vm619_vm15, %v616_v8  ;;  %vm580_vm3 = vcmp.eq.s32.totalorder %v1476_v39, %v576_v18  ;;  %vm584_vm5 = vcmp.eq.s32.totalorder %v1697_v50, %v576_v18  ;;  %vm581_vm7 = vcmp.eq.s32.totalorder %v1476_v39, %v577_v21  ;;  %vm585_vm11 = vcmp.eq.s32.totalorder %v1697_v50, %v577_v21 }
  0xba   : > { %v597_v23 = vsel %vm580_vm3, %v589_v19, 0.0  ;;  %v572_v34 = vsel %vm554_vm4, %v560_v49, 0.0  ;;  %v601_v35 = vsel %vm584_vm5, %v589_v19, 0.0  ;;  %v569_v36 = vsel %vm551_vm6, %v561_v25, 0.0 }
  0xbb   : > { %v1856_v29 = vadd.f32 %v597_v23, %v568_v22  ;;  %v598_v37 = vsel %vm581_vm7, %v590_v27, 0.0  ;;  %v573_v38 = vsel %vm555_vm8, %v561_v25, 0.0  ;;  %v602_v40 = vsel %vm585_vm11, %v590_v27, 0.0 }
  0xbc   : > { %v579_v42 = vperm.slane %v252_v5, 3  ;;  %vm1859_vm12 = vcmp.eq.s32.totalorder %v1476_v39, %v548_v31  ;;  %v1864_v1 = vadd.f32 %v601_v35, %v572_v34  ;;  %v1866_v60 = vadd.f32 %v598_v37, %v569_v36 }
  0xbd   : > { %vm582_vm13 = vcmp.eq.s32.totalorder %v1476_v39, %v578_v12  ;;  %vm553_vm14 = vcmp.eq.s32.totalorder %v1476_v39, %v549_v32  ;;  %v1870_v13 = vadd.f32 %v602_v40, %v573_v38  ;;  %vm586_vm9 = vcmp.eq.s32.totalorder %v1697_v50, %v578_v12 }
  0xbe   : > { %1073 = vmatmul.msk.f32.gmra.mxu0 %vm619_vm15, %v617_v9  ;;  %vm583_vm0 = vcmp.eq.s32.totalorder %v1476_v39, %v579_v42  ;;  %vm557_vm10 = vcmp.eq.s32.totalorder %v1697_v50, %v549_v32  ;;  %vm587_vm1 = vcmp.eq.s32.totalorder %v1697_v50, %v579_v42  ;;  %v570_v7 = vsel %vm1859_vm12, %v562_v41, 0.0 }
  0xbf   : > { %1079 = vmatmul.msk.f32.gmra.mxu1 %vm619_vm15, %v617_v9  ;;  %v599_v55 = vsel %vm582_vm13, %v591_v44, 0.0  ;;  %v571_v62 = vsel %vm553_vm14, %v563_v51, 0.0  ;;  %v603_v39 = vsel %vm586_vm9, %v591_v44, 0.0  ;;  %v600_v26 = vsel %vm583_vm0, %v592_v45, 0.0 }
  0xc0   : > { %1085 = vmatmul.msk.f32.gmra.mxu2 %vm619_vm15, %v617_v9  ;;  %v575_v47 = vsel %vm557_vm10, %v563_v51, 0.0  ;;  %v604_v48 = vsel %vm587_vm1, %v592_v45, 0.0  ;;  %v1884_v52 = vadd.f32 %v599_v55, %v570_v7  ;;  %v1888_v59 = vadd.f32 %v600_v26, %v571_v62 }
  0xc1   : > { %1091 = vmatmul.msk.f32.gmra.mxu3 %vm619_vm15, %v617_v9  ;;  %v1890_v15 = vadd.f32 %v604_v48, %v575_v47  ;;  %vm829_vm2 = vcmask 1040384   ;;  %vm831_vm3 = vcmask 1042434   ;;  %vm833_vm4 = vcmask 1041408  }
  0xc2   : > { %vm1908_vm5 = vcmp.lt.s32.totalorder %v266_v33, 512 }
  0xc6   : > { %1074 = vmatmul.msk.f32.gmra.mxu0 %vm619_vm15, %v618_v14 }
  0xc7   : > { %1080 = vmatmul.msk.f32.gmra.mxu1 %vm619_vm15, %v618_v14 }
  0xc8   : > { %1086 = vmatmul.msk.f32.gmra.mxu2 %vm619_vm15, %v618_v14 }
  0xc9   : > { %1092 = vmatmul.msk.f32.gmra.mxu3 %vm619_vm15, %v618_v14  ;;  %vm556_vm15 = vcmp.eq.s32.totalorder %v1697_v50, %v548_v31 }
  0xca   : > { %v574_v17 = vsel %vm556_vm15, %v562_v41, 0.0 }
  0xcb   : > { %v1886_v56 = vadd.f32 %v603_v39, %v574_v17 }
 0x11b   : > { %v655_v28 = vpop.f32.mrf.mxu0 }
 0x11c   : > { %v690_v30 = vpop.f32.mrf.mxu1  ;;  %v778_v3 = vmul.f32 %v655_v28, %v1856_v29 }
 0x11d   : > { %v779_v9 = vmul.f32 %v690_v30, %v1866_v60 }
 0x123   : > { %v725_v54 = vpop.f32.mrf.mxu2  ;;  %v658_v61 = vpop.f32.mrf.mxu0 }
 0x124   : > { %v760_v57 = vpop.f32.mrf.mxu3  ;;  %v782_v58 = vmul.f32 %v658_v61, %v1864_v1  ;;  %v693_v8 = vpop.f32.mrf.mxu1  ;;  %v780_v4 = vmul.f32 %v725_v54, %v1884_v52 }
 0x125   : > { %v783_v14 = vmul.f32 %v693_v8, %v1870_v13  ;;  %v781_v18 = vmul.f32 %v760_v57, %v1888_v59 }
 0x126   : > { %v786_v46 = vadd.f32 %v782_v58, %v778_v3 }
 0x127   : > { %v793_v50 = vadd.f32 %v783_v14, %v779_v9 }
 0x128   : > { %v787_v53 = vrot.slane %v786_v46, 4 }
 0x129   : > { %v794_v63 = vrot.slane %v793_v50, 4 }
 0x12a   : > { %v788_v16 = vadd.f32 %v787_v53, %v786_v46 }
 0x12b   : > { %v795_v11 = vadd.f32 %v794_v63, %v793_v50  ;;  %v728_v2 = vpop.f32.mrf.mxu2  ;;  %v661_v10 = vpop.f32.mrf.mxu0 }
 0x12c   : > { %v784_v0 = vmul.f32 %v728_v2, %v1886_v56  ;;  %v763_v5 = vpop.f32.mrf.mxu3  ;;  %v696_v6 = vpop.f32.mrf.mxu1  ;;  %v789_v19 = vrot.slane %v788_v16, 2  ;;  %v841_v31 = vmul.f32 %v661_v10, %v1856_v29 }
 0x12d   : > { %v796_v24 = vrot.slane %v795_v11, 2  ;;  %v785_v49 = vmul.f32 %v763_v5, %v1890_v15  ;;  %v842_v42 = vmul.f32 %v696_v6, %v1866_v60 }
 0x12e   : > { %v800_v20 = vadd.f32 %v784_v0, %v780_v4  ;;  %v790_v28 = vadd.f32 %v789_v19, %v788_v16 }
 0x12f   : > { %v797_v21 = vadd.f32 %v796_v24, %v795_v11  ;;  %v807_v22 = vadd.f32 %v785_v49, %v781_v18 }
 0x130   : > { %v801_v23 = vrot.slane %v800_v20, 4  ;;  %v791_v44 = vrot.slane %v790_v28, 1 }
 0x131   : > { %v798_v25 = vrot.slane %v797_v21, 1  ;;  %v808_v27 = vrot.slane %v807_v22, 4 }
 0x132   : > { %v802_v30 = vadd.f32 %v801_v23, %v800_v20  ;;  %v792_v58 = vadd.f32 %v791_v44, %v790_v28 }
 0x133   : > { %v809_v12 = vadd.f32 %v808_v27, %v807_v22  ;;  %v731_v32 = vpop.f32.mrf.mxu2  ;;  %v664_v34 = vpop.f32.mrf.mxu0  ;;  %v799_v40 = vadd.f32 %v798_v25, %v797_v21 }
 0x134   : > { %v803_v35 = vrot.slane %v802_v30, 2  ;;  %v766_v36 = vpop.f32.mrf.mxu3  ;;  %v845_v37 = vmul.f32 %v664_v34, %v1864_v1  ;;  %v699_v38 = vpop.f32.mrf.mxu1  ;;  %v843_v17 = vmul.f32 %v731_v32, %v1884_v52  ;;  %v814_v0 = vmax.f32 %v792_v58, 0.0 }
 0x135   : > { %v810_v41 = vrot.slane %v809_v12, 2  ;;  %v846_v43 = vmul.f32 %v699_v38, %v1870_v13  ;;  %v815_v55 = vmax.f32 %v799_v40, 0.0  ;;  %v844_v48 = vmul.f32 %v766_v36, %v1888_v59 }
 0x136   : > { %v804_v51 = vadd.f32 %v803_v35, %v802_v30  ;;  %v849_v3 = vadd.f32 %v845_v37, %v841_v31  ;;  %v818_v28 = vmin.f32 %v814_v0, 1.0 }
 0x137   : > { %v811_v45 = vadd.f32 %v810_v41, %v809_v12  ;;  %v856_v54 = vadd.f32 %v846_v43, %v842_v42  ;;  %v819_v11 = vmin.f32 %v815_v55, 1.0 }
 0x138   : > { %v805_v61 = vrot.slane %v804_v51, 1  ;;  %v850_v7 = vrot.slane %v849_v3, 4 }
 0x139   : > { %v812_v62 = vrot.slane %v811_v45, 1  ;;  %v857_v57 = vrot.slane %v856_v54, 4  ;;  %v826_v22 = vrot.slane %v819_v11, 7 }
 0x13a   : > { %v806_v8 = vadd.f32 %v805_v61, %v804_v51  ;;  %v851_v9 = vadd.f32 %v850_v7, %v849_v3 }
 0x13b   : > { %v813_v14 = vadd.f32 %v812_v62, %v811_v45  ;;  %v858_v39 = vadd.f32 %v857_v57, %v856_v54  ;;  %v734_v26 = vpop.f32.mrf.mxu2  ;;  %v667_v46 = vpop.f32.mrf.mxu0 }
 0x13c   : > { %v816_v47 = vmax.f32 %v806_v8, 0.0  ;;  %v852_v50 = vrot.slane %v851_v9, 2  ;;  %v847_v53 = vmul.f32 %v734_v26, %v1886_v56  ;;  %v769_v63 = vpop.f32.mrf.mxu3  ;;  %v702_v16 = vpop.f32.mrf.mxu1  ;;  %v898_v31 = vmul.f32 %v667_v46, %v1856_v29 }
 0x13d   : > { %v817_v2 = vmax.f32 %v813_v14, 0.0  ;;  %v859_v10 = vrot.slane %v858_v39, 2  ;;  %v848_v4 = vmul.f32 %v769_v63, %v1890_v15  ;;  %v830_v29 = vsel %vm829_vm2, %v818_v28, %v826_v22 }
 0x13e   : > { %v820_v5 = vmin.f32 %v816_v47, 1.0  ;;  %v863_v6 = vadd.f32 %v847_v53, %v843_v17  ;;  %v853_v24 = vadd.f32 %v852_v50, %v851_v9  ;;  %v899_v51 = vmul.f32 %v702_v16, %v1866_v60 }
 0x13f   : > { %v821_v18 = vmin.f32 %v817_v2, 1.0  ;;  %v860_v49 = vadd.f32 %v859_v10, %v858_v39  ;;  %v870_v19 = vadd.f32 %v848_v4, %v844_v48 }
 0x140   : > { %v827_v20 = vrot.slane %v820_v5, 6  ;;  %v864_v21 = vrot.slane %v863_v6, 4  ;;  %v854_v32 = vrot.slane %v853_v24, 1 }
 0x141   : > { %v828_v23 = vrot.slane %v821_v18, 5  ;;  %v861_v25 = vrot.slane %v860_v49, 1  ;;  %v871_v27 = vrot.slane %v870_v19, 4 }
 0x142   : > { %v865_v30 = vadd.f32 %v864_v21, %v863_v6  ;;  %v855_v7 = vadd.f32 %v854_v32, %v853_v24 }
 0x143   : > { %v832_v12 = vsel %vm831_vm3, %v827_v20, %v828_v23  ;;  %v862_v34 = vadd.f32 %v861_v25, %v860_v49  ;;  %v872_v35 = vadd.f32 %v871_v27, %v870_v19  ;;  %v737_v36 = vpop.f32.mrf.mxu2  ;;  %v670_v37 = vpop.f32.mrf.mxu0 }
 0x144   : > { %v866_v38 = vrot.slane %v865_v30, 2  ;;  %v772_v40 = vpop.f32.mrf.mxu3  ;;  %v902_v41 = vmul.f32 %v670_v37, %v1864_v1  ;;  %v705_v42 = vpop.f32.mrf.mxu1  ;;  %v834_v61 = vsel %vm833_vm4, %v830_v29, %v832_v12  ;;  %v877_v9 = vmax.f32 %v855_v7, 0.0 }
 0x145   : > { %v873_v44 = vrot.slane %v872_v35, 2  ;;  %v903_v3 = vmul.f32 %v705_v42, %v1870_v13  ;;  %v878_v55 = vmax.f32 %v862_v34, 0.0  ;;  %840 = vst.msk [vmem:[%s1918_s17] ss:$4 sm:$0xf] %vm1908_vm5, %v834_v61  ;;  %v900_v47 = vmul.f32 %v737_v36, %v1884_v52 }
 0x146   : > { %v867_v45 = vadd.f32 %v866_v38, %v865_v30  ;;  %v906_v54 = vadd.f32 %v902_v41, %v898_v31  ;;  %v901_v48 = vmul.f32 %v772_v40, %v1888_v59  ;;  %v881_v24 = vmin.f32 %v877_v9, 1.0 }
 0x147   : > { %v874_v1 = vadd.f32 %v873_v44, %v872_v35  ;;  %v913_v62 = vadd.f32 %v903_v3, %v899_v51  ;;  %v882_v14 = vmin.f32 %v878_v55, 1.0 }
 0x148   : > { %v868_v33 = vrot.slane %v867_v45, 1  ;;  %v907_v57 = vrot.slane %v906_v54, 4 }
 0x149   : > { %v875_v60 = vrot.slane %v874_v1, 1  ;;  %v914_v58 = vrot.slane %v913_v62, 4  ;;  %v889_v0 = vrot.slane %v882_v14, 7 }
 0x14a   : > { %v869_v13 = vadd.f32 %v868_v33, %v867_v45  ;;  %v908_v8 = vadd.f32 %v907_v57, %v906_v54 }
 0x14b   : > { %v876_v17 = vadd.f32 %v875_v60, %v874_v1  ;;  %v915_v39 = vadd.f32 %v914_v58, %v913_v62  ;;  %v740_v26 = vpop.f32.mrf.mxu2  ;;  %v892_v22 = vsel %vm829_vm2, %v881_v24, %v889_v0 }
 0x14c   : > { %v879_v46 = vmax.f32 %v869_v13, 0.0  ;;  %v904_v50 = vmul.f32 %v740_v26, %v1886_v56  ;;  %v775_v53 = vpop.f32.mrf.mxu3  ;;  %v909_v16 = vrot.slane %v908_v8, 2 }
 0x14d   : > { %v880_v63 = vmax.f32 %v876_v17, 0.0  ;;  %v916_v11 = vrot.slane %v915_v39, 2  ;;  %v905_v2 = vmul.f32 %v775_v53, %v1890_v15 }
 0x14e   : > { %v883_v10 = vmin.f32 %v879_v46, 1.0  ;;  %v920_v4 = vadd.f32 %v904_v50, %v900_v47  ;;  %v910_v59 = vadd.f32 %v909_v16, %v908_v8 }
 0x14f   : > { %v884_v5 = vmin.f32 %v880_v63, 1.0  ;;  %v917_v6 = vadd.f32 %v916_v11, %v915_v39  ;;  %v927_v18 = vadd.f32 %v905_v2, %v901_v48 }
 0x150   : > { %v890_v49 = vrot.slane %v883_v10, 6  ;;  %v921_v52 = vrot.slane %v920_v4, 4  ;;  %v911_v30 = vrot.slane %v910_v59, 1 }
 0x151   : > { %v891_v19 = vrot.slane %v884_v5, 5  ;;  %v918_v20 = vrot.slane %v917_v6, 1  ;;  %v928_v56 = vrot.slane %v927_v18, 4 }
 0x152   : > { %v922_v21 = vadd.f32 %v921_v52, %v920_v4  ;;  %v912_v36 = vadd.f32 %v911_v30, %v910_v59 }
 0x153   : > { %v893_v15 = vsel %vm831_vm3, %v890_v49, %v891_v19  ;;  %v919_v23 = vadd.f32 %v918_v20, %v917_v6  ;;  %v929_v25 = vadd.f32 %v928_v56, %v927_v18 }
 0x154   : > { %v923_v27 = vrot.slane %v922_v21, 2  ;;  %v894_v28 = vsel %vm833_vm4, %v892_v22, %v893_v15  ;;  %v934_v29 = vmax.f32 %v912_v36, 0.0 }
 0x155   : > { %v930_v31 = vrot.slane %v929_v25, 2  ;;  %1093 = vst.msk [vmem:[%s1918_s17 + $0x1] ss:$4 sm:$0xf] %vm1908_vm5, %v894_v28  ;;  %v935_v32 = vmax.f32 %v919_v23, 0.0 }
 0x156   : > { %v924_v12 = vadd.f32 %v923_v27, %v922_v21  ;;  %v938_v61 = vmin.f32 %v934_v29, 1.0 }
 0x157   : > { %v931_v34 = vadd.f32 %v930_v31, %v929_v25  ;;  %v939_v40 = vmin.f32 %v935_v32, 1.0 }
 0x158   : > { %v925_v35 = vrot.slane %v924_v12, 1 }
 0x159   : > { %v932_v37 = vrot.slane %v931_v34, 1  ;;  %v946_v3 = vrot.slane %v939_v40, 7 }
 0x15a   : > { %v926_v38 = vadd.f32 %v925_v35, %v924_v12 }
 0x15b   : > { %v933_v41 = vadd.f32 %v932_v37, %v931_v34  ;;  %v949_v55 = vsel %vm829_vm2, %v938_v61, %v946_v3 }
 0x15c   : > { %v936_v42 = vmax.f32 %v926_v38, 0.0 }
 0x15d   : > { %v937_v44 = vmax.f32 %v933_v41, 0.0 }
 0x15e   : > { %v940_v51 = vmin.f32 %v936_v42, 1.0 }
 0x15f   : > { %v941_v45 = vmin.f32 %v937_v44, 1.0 }
 0x160   : > { %v947_v54 = vrot.slane %v940_v51, 6 }
 0x161   : > { %v948_v7 = vrot.slane %v941_v45, 5 }
 0x163   : > { %v950_v1 = vsel %vm831_vm3, %v947_v54, %v948_v7 }
 0x164   : > { %v951_v62 = vsel %vm833_vm4, %v949_v55, %v950_v1 }
 0x165   : > { %1094 = vst.msk [vmem:[%s1918_s17 + $0x2] ss:$4 sm:$0xf] %vm1908_vm5, %v951_v62 }
 0x166   : > { %1257 = shalt.err (!%p1254_p8)
}
 0x167   : > { %1112 = dma.vmem_to_hbm [thread:$0]  (%p1382_p12), %s970_s14, 256, %s972_s15, %s956_s16  }
 0x168 PF: > { %p1129_p9 = scmp.ge.s32.totalorder %s1300_s12, 2  ;;  %s983_s3 = sand.u32 1, %s1288_s9  }
 0x169   : > { %s984_s29 = scalar_lea.sflag [#allocation4], %s983_s3 }
 0x16a   : > { %p1123_p10 = pnand %p1129_p9, %p1387_p2 }
 0x16c   : > { %p1124_p13 = pneg %p1123_p10 }
 0x16e   : > { %1283 = dma.done.wait (%p1124_p13), %s984_s29, 256  }
 0x16f   : > { %1285 = vsyncadd (%p1124_p13), %s984_s29, 4294967040  ;;  %p16_p0 = scmp.ge.s32.totalorder %s1362_s23, 6   ;;  %s1986_s9 = smov %s1292_s10 }
 0x170   : > { %s1987_s10 = smov %s1296_s11  ;;  %s1988_s11 = smov %s1374_s26 }
 0x171   : > { %s1989_s12 = smov %s1362_s23  ;;  %18 = sbr.rel (!%p16_p0) target bundleno = 6 (0x6), region = 82 }
 0x176   :  { %990 = vsyncpa [#allocation3], 1 }
 0x177   :  { %992 = vsyncpa [#allocation3 + $0x1], 1 }
 0x178   :  { %993 = vsyncpa [#allocation6], 1 }
 0x179   :  { %995 = vsyncpa [#allocation6 + $0x1], 1 }
 0x17a   :  { %996 = vsyncpa [#allocation4], 1 }
 0x17b   :  { %998 = vsyncpa [#allocation4 + $0x1], 1 }

</bundles_post_ra>
